<compile_context>
chip_gen: v5e
topology: v5e:2x2
jax: 0.10.0
libtpu: 0.0.40
codegen_flags: <defaults>
</compile_context>

<pallas_src>
import math
from functools import partial

import jax
import jax.numpy as jnp
from jax.experimental import pallas as pl
from jax.experimental.pallas import tpu as pltpu


def _vmem_limit_bytes():
    try:
        cap = int(pltpu.get_tpu_info().vmem_capacity_bytes)
    except Exception:
        cap = 64 * 1024 * 1024  # conservative fallback (v7x per-TensorCore capacity)
    return max(32 * 1024 * 1024, (cap * 3) // 4)


_VMEM_LIMIT = _vmem_limit_bytes()


def _pick_tile(dim, candidates=(512, 256, 128)):
    """Largest lane-friendly tile that divides `dim`; else the full extent."""
    for c in candidates:
        if dim >= c and dim % c == 0:
            return c
    return dim


def _conv3x3_relu_kernel(x_ref, w_ref, o_ref, acc_ref, *, H, W, KH, KW):
    # x_ref:   (1, Hp, Wp, ck)   bf16  padded input tile (full spatial, Cin slice)
    # w_ref:   (KH, KW, ck, tn)  bf16  weight tile
    # o_ref:   (1, H, W, tn)     f32   output tile (revisited across the Cin grid axis)
    # acc_ref: (H*W, tn)         f32   accumulator scratch
    @pl.when(pl.program_id(2) == 0)
    def _init():
        acc_ref[...] = jnp.zeros_like(acc_ref)

    x = x_ref[0]                              # (Hp, Wp, ck)
    acc = acc_ref[...]
    for kh in range(KH):                      # 9 shifted-window MXU matmuls == direct conv
        for kw in range(KW):
            win = x[kh:kh + H, kw:kw + W, :].reshape(H * W, -1)
            acc = acc + jax.lax.dot_general(
                win, w_ref[kh, kw],
                dimension_numbers=(((1,), (0,)), ((), ())),
                preferred_element_type=jnp.float32)
    acc_ref[...] = acc

    @pl.when(pl.program_id(2) == pl.num_programs(2) - 1)
    def _epilogue():                          # fused ReLU + store (f32 accumulation kept)
        tn = acc_ref.shape[-1]
        o_ref[...] = jnp.maximum(acc_ref[...], 0.0).reshape(1, H, W, tn).astype(o_ref.dtype)


def conv_relu(x_nchw, w_oihw):
    """ConvRelu.forward: relu(conv2d(x, w, stride=1, padding=1, bias=None))."""
    N, Cin, H, W = x_nchw.shape
    Cout, Cin_w, KH, KW = w_oihw.shape
    assert Cin_w == Cin and KH == 3 and KW == 3

    x = jnp.transpose(x_nchw, (0, 2, 3, 1)).astype(jnp.bfloat16)   # NCHW -> NHWC (bf16 MXU operand)
    w = jnp.transpose(w_oihw, (2, 3, 1, 0)).astype(jnp.bfloat16)   # OIHW -> HWIO
    xp = jnp.pad(x, ((0, 0), (1, 1), (1, 1), (0, 0)))              # zero pad = padding=1
    Hp, Wp = H + 2, W + 2

    ck = _pick_tile(Cin)          # reduction (Cin) tile
    tn = _pick_tile(Cout)         # output-channel tile (lane-dense 128-multiple when possible)
    grid = (N, Cout // tn, Cin // ck)

    out_nhwc = pl.pallas_call(
        partial(_conv3x3_relu_kernel, H=H, W=W, KH=KH, KW=KW),
        out_shape=jax.ShapeDtypeStruct((N, H, W, Cout), jnp.float32),
        grid_spec=pltpu.PrefetchScalarGridSpec(
            num_scalar_prefetch=0,
            grid=grid,
            in_specs=[
                pl.BlockSpec((1, Hp, Wp, ck), lambda n, j, k: (n, 0, 0, k)),
                pl.BlockSpec((KH, KW, ck, tn), lambda n, j, k: (0, 0, k, j)),
            ],
            out_specs=pl.BlockSpec((1, H, W, tn), lambda n, j, k: (n, 0, 0, j)),
            scratch_shapes=[pltpu.VMEM((H * W, tn), jnp.float32)],
        ),
        compiler_params=pltpu.CompilerParams(
            dimension_semantics=("parallel", "parallel", "arbitrary"),
            vmem_limit_bytes=_VMEM_LIMIT,
        ),
    )(xp, w)
    return jnp.transpose(out_nhwc, (0, 3, 1, 2))                   # NHWC -> NCHW


def _reference(x_nchw, w_oihw):
    """Reference conv+ReLU with the same bf16 operand rounding (f32 accumulation)."""
    xb = x_nchw.astype(jnp.bfloat16)
    wb = w_oihw.astype(jnp.bfloat16)
    y = jax.lax.conv_general_dilated(
        xb, wb, window_strides=(1, 1), padding=((1, 1), (1, 1)),
        dimension_numbers=("NCHW", "OIHW", "NCHW"),
        preferred_element_type=jnp.float32)
    return jnp.maximum(y, 0.0)


if __name__ == "__main__":
    key = jax.random.PRNGKey(0)
    k1, k2, k3, k4 = jax.random.split(key, 4)
    fwd = jax.jit(conv_relu)

    # Case 1: ConvRelu(4 -> 32) on a (2, 4, 16, 16) NCHW input (module-sized example).
    x1 = jax.random.normal(k1, (2, 4, 16, 16), jnp.float32)
    w1 = jax.random.normal(k2, (32, 4, 3, 3), jnp.float32) * math.sqrt(2.0 / (3 * 3 * 4))
    y1 = jax.block_until_ready(fwd(x1, w1))
    r1 = _reference(x1, w1)
    assert y1.shape == (2, 32, 16, 16), y1.shape
    assert bool(jnp.all(jnp.isfinite(y1)))
    assert bool(jnp.all(y1 >= 0.0))
    assert bool(jnp.allclose(y1, r1, atol=2e-2, rtol=2e-2))

    # Case 2: ConvRelu(1024 -> 256) exercising the Cin-reduction grid (2 k-steps) and
    # a 256-wide Cout tile (full-width MXU on v6e/v7x).
    x2 = jax.random.normal(k3, (1, 1024, 8, 8), jnp.float32)
    w2 = jax.random.normal(k4, (256, 1024, 3, 3), jnp.float32) * math.sqrt(2.0 / (3 * 3 * 1024))
    y2 = jax.block_until_ready(fwd(x2, w2))
    r2 = _reference(x2, w2)
    assert y2.shape == (1, 256, 8, 8), y2.shape
    assert bool(jnp.all(jnp.isfinite(y2)))
    assert bool(jnp.all(y2 >= 0.0))
    assert bool(jnp.allclose(y2, r2, atol=2e-2, rtol=2e-2))

    print("KERNEL_OK")
</pallas_src>

<mosaic_0001>
module attributes {stable_mosaic.version = 11 : i64} {
  func.func @_conv3x3_relu_kernel(%arg0: i32, %arg1: i32, %arg2: i32, %arg3: memref<1x18x18x4xbf16, #tpu.memory_space<vmem>>, %arg4: memref<3x3x4x32xbf16, #tpu.memory_space<vmem>>, %arg5: memref<1x16x16x32xf32, #tpu.memory_space<vmem>>, %arg6: memref<256x32xf32, #tpu.memory_space<vmem>>) attributes {dimension_semantics = [#tpu.dimension_semantics<parallel>, #tpu.dimension_semantics<parallel>, #tpu.dimension_semantics<arbitrary>], iteration_bounds = array<i64: 2, 1, 1>, scalar_prefetch = 0 : i64, scratch_operands = 1 : i64, tpu.core_type = #tpu.core_type<tc>, window_params = [{transform_indices = @transform_0, window_bounds = array<i64: 1, 18, 18, 4>}, {transform_indices = @transform_1, window_bounds = array<i64: 3, 3, 4, 32>}, {transform_indices = @transform_2, window_bounds = array<i64: 1, 16, 16, 32>}]} {
    %c0_i32 = arith.constant 0 : i32
    %0 = arith.cmpi eq, %arg2, %c0_i32 : i32
    %1 = arith.extui %0 : i1 to i32
    %c0_i32_0 = arith.constant 0 : i32
    %2 = arith.cmpi ne, %1, %c0_i32_0 : i32
    scf.if %2 {
      %cst_52 = arith.constant 0.000000e+00 : f32
      %64 = vector.broadcast %cst_52 : f32 to vector<256x32xf32>
      %c0_53 = arith.constant 0 : index
      %c0_54 = arith.constant 0 : index
      %65 = vector.load %arg6[%c0_53, %c0_54] : memref<256x32xf32, #tpu.memory_space<vmem>>, vector<256x32xf32>
      tpu.vector_store %arg6[%c0_53, %c0_54], %64 {strides = array<i32>} : memref<256x32xf32, #tpu.memory_space<vmem>>, vector<256x32xf32>,
    } else {
    }
    %c0 = arith.constant 0 : index
    %c0_1 = arith.constant 0 : index
    %c0_2 = arith.constant 0 : index
    %c0_3 = arith.constant 0 : index
    %3 = vector.load %arg3[%c0, %c0_1, %c0_2, %c0_3] : memref<1x18x18x4xbf16, #tpu.memory_space<vmem>>, vector<1x18x18x4xbf16>
    %4 = vector.shape_cast %3 : vector<1x18x18x4xbf16> to vector<18x18x4xbf16>
    %c0_4 = arith.constant 0 : index
    %c0_5 = arith.constant 0 : index
    %5 = vector.load %arg6[%c0_4, %c0_5] : memref<256x32xf32, #tpu.memory_space<vmem>>, vector<256x32xf32>
    %6 = vector.extract_strided_slice %4 {offsets = [0, 0, 0], sizes = [16, 16, 4], strides = [1, 1, 1]} : vector<18x18x4xbf16> to vector<16x16x4xbf16>
    %7 = vector.shape_cast %6 : vector<16x16x4xbf16> to vector<256x4xbf16>
    %c0_6 = arith.constant 0 : index
    %c0_7 = arith.constant 0 : index
    %c0_8 = arith.constant 0 : index
    %c0_9 = arith.constant 0 : index
    %8 = vector.load %arg4[%c0_6, %c0_7, %c0_8, %c0_9] : memref<3x3x4x32xbf16, #tpu.memory_space<vmem>>, vector<1x1x4x32xbf16>
    %9 = vector.shape_cast %8 : vector<1x1x4x32xbf16> to vector<4x32xbf16>
    %cst = arith.constant dense<0.000000e+00> : vector<256x32xf32>
    %10 = tpu.matmul %7, %9, %cst {dimension_numbers = #tpu.dot_dimension_numbers<[1], [0], [0], [1], [0, 0, 1, 1], [], []>} : vector<256x4xbf16>, vector<4x32xbf16>, vector<256x32xf32> -> vector<256x32xf32>
    %11 = arith.addf %5, %10 : vector<256x32xf32>
    %12 = vector.extract_strided_slice %4 {offsets = [0, 1, 0], sizes = [16, 16, 4], strides = [1, 1, 1]} : vector<18x18x4xbf16> to vector<16x16x4xbf16>
    %13 = vector.shape_cast %12 : vector<16x16x4xbf16> to vector<256x4xbf16>
    %c0_10 = arith.constant 0 : index
    %c1 = arith.constant 1 : index
    %c0_11 = arith.constant 0 : index
    %c0_12 = arith.constant 0 : index
    %14 = vector.load %arg4[%c0_10, %c1, %c0_11, %c0_12] : memref<3x3x4x32xbf16, #tpu.memory_space<vmem>>, vector<1x1x4x32xbf16>
    %15 = vector.shape_cast %14 : vector<1x1x4x32xbf16> to vector<4x32xbf16>
    %cst_13 = arith.constant dense<0.000000e+00> : vector<256x32xf32>
    %16 = tpu.matmul %13, %15, %cst_13 {dimension_numbers = #tpu.dot_dimension_numbers<[1], [0], [0], [1], [0, 0, 1, 1], [], []>} : vector<256x4xbf16>, vector<4x32xbf16>, vector<256x32xf32> -> vector<256x32xf32>
    %17 = arith.addf %11, %16 : vector<256x32xf32>
    %18 = vector.extract_strided_slice %4 {offsets = [0, 2, 0], sizes = [16, 16, 4], strides = [1, 1, 1]} : vector<18x18x4xbf16> to vector<16x16x4xbf16>
    %19 = vector.shape_cast %18 : vector<16x16x4xbf16> to vector<256x4xbf16>
    %c0_14 = arith.constant 0 : index
    %c2 = arith.constant 2 : index
    %c0_15 = arith.constant 0 : index
    %c0_16 = arith.constant 0 : index
    %20 = vector.load %arg4[%c0_14, %c2, %c0_15, %c0_16] : memref<3x3x4x32xbf16, #tpu.memory_space<vmem>>, vector<1x1x4x32xbf16>
    %21 = vector.shape_cast %20 : vector<1x1x4x32xbf16> to vector<4x32xbf16>
    %cst_17 = arith.constant dense<0.000000e+00> : vector<256x32xf32>
    %22 = tpu.matmul %19, %21, %cst_17 {dimension_numbers = #tpu.dot_dimension_numbers<[1], [0], [0], [1], [0, 0, 1, 1], [], []>} : vector<256x4xbf16>, vector<4x32xbf16>, vector<256x32xf32> -> vector<256x32xf32>
    %23 = arith.addf %17, %22 : vector<256x32xf32>
    %24 = vector.extract_strided_slice %4 {offsets = [1, 0, 0], sizes = [16, 16, 4], strides = [1, 1, 1]} : vector<18x18x4xbf16> to vector<16x16x4xbf16>
    %25 = vector.shape_cast %24 : vector<16x16x4xbf16> to vector<256x4xbf16>
    %c1_18 = arith.constant 1 : index
    %c0_19 = arith.constant 0 : index
    %c0_20 = arith.constant 0 : index
    %c0_21 = arith.constant 0 : index
    %26 = vector.load %arg4[%c1_18, %c0_19, %c0_20, %c0_21] : memref<3x3x4x32xbf16, #tpu.memory_space<vmem>>, vector<1x1x4x32xbf16>
    %27 = vector.shape_cast %26 : vector<1x1x4x32xbf16> to vector<4x32xbf16>
    %cst_22 = arith.constant dense<0.000000e+00> : vector<256x32xf32>
    %28 = tpu.matmul %25, %27, %cst_22 {dimension_numbers = #tpu.dot_dimension_numbers<[1], [0], [0], [1], [0, 0, 1, 1], [], []>} : vector<256x4xbf16>, vector<4x32xbf16>, vector<256x32xf32> -> vector<256x32xf32>
    %29 = arith.addf %23, %28 : vector<256x32xf32>
    %30 = vector.extract_strided_slice %4 {offsets = [1, 1, 0], sizes = [16, 16, 4], strides = [1, 1, 1]} : vector<18x18x4xbf16> to vector<16x16x4xbf16>
    %31 = vector.shape_cast %30 : vector<16x16x4xbf16> to vector<256x4xbf16>
    %c1_23 = arith.constant 1 : index
    %c1_24 = arith.constant 1 : index
    %c0_25 = arith.constant 0 : index
    %c0_26 = arith.constant 0 : index
    %32 = vector.load %arg4[%c1_23, %c1_24, %c0_25, %c0_26] : memref<3x3x4x32xbf16, #tpu.memory_space<vmem>>, vector<1x1x4x32xbf16>
    %33 = vector.shape_cast %32 : vector<1x1x4x32xbf16> to vector<4x32xbf16>
    %cst_27 = arith.constant dense<0.000000e+00> : vector<256x32xf32>
    %34 = tpu.matmul %31, %33, %cst_27 {dimension_numbers = #tpu.dot_dimension_numbers<[1], [0], [0], [1], [0, 0, 1, 1], [], []>} : vector<256x4xbf16>, vector<4x32xbf16>, vector<256x32xf32> -> vector<256x32xf32>
    %35 = arith.addf %29, %34 : vector<256x32xf32>
    %36 = vector.extract_strided_slice %4 {offsets = [1, 2, 0], sizes = [16, 16, 4], strides = [1, 1, 1]} : vector<18x18x4xbf16> to vector<16x16x4xbf16>
    %37 = vector.shape_cast %36 : vector<16x16x4xbf16> to vector<256x4xbf16>
    %c1_28 = arith.constant 1 : index
    %c2_29 = arith.constant 2 : index
    %c0_30 = arith.constant 0 : index
    %c0_31 = arith.constant 0 : index
    %38 = vector.load %arg4[%c1_28, %c2_29, %c0_30, %c0_31] : memref<3x3x4x32xbf16, #tpu.memory_space<vmem>>, vector<1x1x4x32xbf16>
    %39 = vector.shape_cast %38 : vector<1x1x4x32xbf16> to vector<4x32xbf16>
    %cst_32 = arith.constant dense<0.000000e+00> : vector<256x32xf32>
    %40 = tpu.matmul %37, %39, %cst_32 {dimension_numbers = #tpu.dot_dimension_numbers<[1], [0], [0], [1], [0, 0, 1, 1], [], []>} : vector<256x4xbf16>, vector<4x32xbf16>, vector<256x32xf32> -> vector<256x32xf32>
    %41 = arith.addf %35, %40 : vector<256x32xf32>
    %42 = vector.extract_strided_slice %4 {offsets = [2, 0, 0], sizes = [16, 16, 4], strides = [1, 1, 1]} : vector<18x18x4xbf16> to vector<16x16x4xbf16>
    %43 = vector.shape_cast %42 : vector<16x16x4xbf16> to vector<256x4xbf16>
    %c2_33 = arith.constant 2 : index
    %c0_34 = arith.constant 0 : index
    %c0_35 = arith.constant 0 : index
    %c0_36 = arith.constant 0 : index
    %44 = vector.load %arg4[%c2_33, %c0_34, %c0_35, %c0_36] : memref<3x3x4x32xbf16, #tpu.memory_space<vmem>>, vector<1x1x4x32xbf16>
    %45 = vector.shape_cast %44 : vector<1x1x4x32xbf16> to vector<4x32xbf16>
    %cst_37 = arith.constant dense<0.000000e+00> : vector<256x32xf32>
    %46 = tpu.matmul %43, %45, %cst_37 {dimension_numbers = #tpu.dot_dimension_numbers<[1], [0], [0], [1], [0, 0, 1, 1], [], []>} : vector<256x4xbf16>, vector<4x32xbf16>, vector<256x32xf32> -> vector<256x32xf32>
    %47 = arith.addf %41, %46 : vector<256x32xf32>
    %48 = vector.extract_strided_slice %4 {offsets = [2, 1, 0], sizes = [16, 16, 4], strides = [1, 1, 1]} : vector<18x18x4xbf16> to vector<16x16x4xbf16>
    %49 = vector.shape_cast %48 : vector<16x16x4xbf16> to vector<256x4xbf16>
    %c2_38 = arith.constant 2 : index
    %c1_39 = arith.constant 1 : index
    %c0_40 = arith.constant 0 : index
    %c0_41 = arith.constant 0 : index
    %50 = vector.load %arg4[%c2_38, %c1_39, %c0_40, %c0_41] : memref<3x3x4x32xbf16, #tpu.memory_space<vmem>>, vector<1x1x4x32xbf16>
    %51 = vector.shape_cast %50 : vector<1x1x4x32xbf16> to vector<4x32xbf16>
    %cst_42 = arith.constant dense<0.000000e+00> : vector<256x32xf32>
    %52 = tpu.matmul %49, %51, %cst_42 {dimension_numbers = #tpu.dot_dimension_numbers<[1], [0], [0], [1], [0, 0, 1, 1], [], []>} : vector<256x4xbf16>, vector<4x32xbf16>, vector<256x32xf32> -> vector<256x32xf32>
    %53 = arith.addf %47, %52 : vector<256x32xf32>
    %54 = vector.extract_strided_slice %4 {offsets = [2, 2, 0], sizes = [16, 16, 4], strides = [1, 1, 1]} : vector<18x18x4xbf16> to vector<16x16x4xbf16>
    %55 = vector.shape_cast %54 : vector<16x16x4xbf16> to vector<256x4xbf16>
    %c2_43 = arith.constant 2 : index
    %c2_44 = arith.constant 2 : index
    %c0_45 = arith.constant 0 : index
    %c0_46 = arith.constant 0 : index
    %56 = vector.load %arg4[%c2_43, %c2_44, %c0_45, %c0_46] : memref<3x3x4x32xbf16, #tpu.memory_space<vmem>>, vector<1x1x4x32xbf16>
    %57 = vector.shape_cast %56 : vector<1x1x4x32xbf16> to vector<4x32xbf16>
    %cst_47 = arith.constant dense<0.000000e+00> : vector<256x32xf32>
    %58 = tpu.matmul %55, %57, %cst_47 {dimension_numbers = #tpu.dot_dimension_numbers<[1], [0], [0], [1], [0, 0, 1, 1], [], []>} : vector<256x4xbf16>, vector<4x32xbf16>, vector<256x32xf32> -> vector<256x32xf32>
    %59 = arith.addf %53, %58 : vector<256x32xf32>
    %c0_48 = arith.constant 0 : index
    %c0_49 = arith.constant 0 : index
    %60 = vector.load %arg6[%c0_48, %c0_49] : memref<256x32xf32, #tpu.memory_space<vmem>>, vector<256x32xf32>
    tpu.vector_store %arg6[%c0_48, %c0_49], %59 {strides = array<i32>} : memref<256x32xf32, #tpu.memory_space<vmem>>, vector<256x32xf32>,
    %c0_i32_50 = arith.constant 0 : i32
    %61 = arith.cmpi eq, %arg2, %c0_i32_50 : i32
    %62 = arith.extui %61 : i1 to i32
    %c0_i32_51 = arith.constant 0 : i32
    %63 = arith.cmpi ne, %62, %c0_i32_51 : i32
    scf.if %63 {
      %c0_52 = arith.constant 0 : index
      %c0_53 = arith.constant 0 : index
      %64 = vector.load %arg6[%c0_52, %c0_53] : memref<256x32xf32, #tpu.memory_space<vmem>>, vector<256x32xf32>
      %cst_54 = arith.constant 0.000000e+00 : f32
      %65 = vector.broadcast %cst_54 : f32 to vector<256x32xf32>
      %66 = arith.maximumf %64, %65 : vector<256x32xf32>
      %67 = vector.shape_cast %66 : vector<256x32xf32> to vector<1x16x16x32xf32>
      %c0_55 = arith.constant 0 : index
      %c0_56 = arith.constant 0 : index
      %c0_57 = arith.constant 0 : index
      %c0_58 = arith.constant 0 : index
      %68 = vector.load %arg5[%c0_55, %c0_56, %c0_57, %c0_58] : memref<1x16x16x32xf32, #tpu.memory_space<vmem>>, vector<1x16x16x32xf32>
      tpu.vector_store %arg5[%c0_55, %c0_56, %c0_57, %c0_58], %67 {strides = array<i32>} : memref<1x16x16x32xf32, #tpu.memory_space<vmem>>, vector<1x16x16x32xf32>,
    } else {
    }
    return
  }
  func.func @transform_0(%arg0: i32, %arg1: i32, %arg2: i32) -> (i32, i32, i32, i32) {
    %c0_i32 = arith.constant 0 : i32
    %c0_i32_0 = arith.constant 0 : i32
    %c0_i32_1 = arith.constant 0 : i32
    return %arg0, %c0_i32, %c0_i32_0, %arg2 : i32, i32, i32, i32
  }
  func.func @transform_1(%arg0: i32, %arg1: i32, %arg2: i32) -> (i32, i32, i32, i32) {
    %c0_i32 = arith.constant 0 : i32
    %c0_i32_0 = arith.constant 0 : i32
    %c0_i32_1 = arith.constant 0 : i32
    return %c0_i32, %c0_i32_0, %arg2, %arg1 : i32, i32, i32, i32
  }
  func.func @transform_2(%arg0: i32, %arg1: i32, %arg2: i32) -> (i32, i32, i32, i32) {
    %c0_i32 = arith.constant 0 : i32
    %c0_i32_0 = arith.constant 0 : i32
    %c0_i32_1 = arith.constant 0 : i32
    return %arg0, %c0_i32, %c0_i32_0, %arg1 : i32, i32, i32, i32
  }
}

</mosaic_0001>

<bundles_post_ra>
// kernel: conv_relu.1
= control target key start
LH: loop header
LB: loop body
LE: loop exit
PB: predicated region body
PF: predicated region fallthrough
CT: control target
= control target key end

     0   :  { %7 = vsyncpa [#allocation4], 0  ;;  %s4430_s0 = inlined_call_operand.vmem [shape: bf16[2,18,18,4], index: 0, kind: input, shape index: {}]   ;;  %s4431_s1 = inlined_call_operand.vmem [shape: bf16[3,3,4,32], index: 1, kind: input, shape index: {}]   ;;  %s4432_s2 = inlined_call_operand.hbm [shape: f32[2,16,16,32], index: 2, kind: output, shape index: {}]  }
   0x1   :  { %9 = vsyncpa [#allocation4 + $0x1], 0  ;;  %s3100_s9 = smov 0   ;;  %s3102_s10 = smov 0  }
   0x2   :  { %s3104_s11 = smov 0   ;;  %s3106_s12 = smov 0  }
   0x3   :  { %s3108_s13 = smov 0   ;;  %s3110_s14 = smov 0  }
   0x4 LB: > { %s2651_s15 = sadd.s32 4294967295, %s3080_s14   ;;  %s2652_s16 = sadd.s32 4294967294, %s3080_s14   ;;  %s3080_s14 = sphi %s3110_s14, %s15_s14   ;;  %s3076_s13 = sphi %s3108_s13, %s4526_s13   ;;  %s3072_s12 = sphi %s3106_s12, %s4525_s12   ;;  %s3068_s11 = sphi %s3104_s11, %s4524_s11   ;;  %s3064_s10 = sphi %s3102_s10, %s4523_s10   ;;  %s3060_s9 = sphi %s3100_s9, %s4522_s9  }
   0x5   : > { %s34_s17 = sadd.s32 1, %s3076_s13  ;;  %s99_s18 = sadd.s32 1, %s3068_s11 }
   0x6   : > { %p36_p0 = scmp.ge.s32.totalorder %s34_s17, 2  ;;  %p109_p1 = scmp.ne.s32.totalorder %s3068_s11, %s3064_s10 }
   0x7   : > { %p110_p2 = scmp.eq.s32.totalorder %s2651_s15, 1  ;;  %p115_p3 = scmp.ne.s32.totalorder %s3064_s10, %s3060_s9 }
   0x8   : > { %s4528_s17 = smov (%p36_p0, %s34_s17), 0  ;;  %p116_p5 = scmp.eq.s32.totalorder %s2652_s16, 1 }
   0x9   : > { %p3140_p4 = por %p110_p2, %p109_p1  ;;  %s94_s20 = ssub.s32 %s3076_s13, %s4528_s17 }
   0xa   : > { %p2656_p6 = scmp.ge.s32.totalorder %s3080_s14, 1  ;;  %p97_p7 = scmp.eq.s32.totalorder %s94_s20, 0 }
   0xb   : > { %p3147_p8 = por %p116_p5, %p115_p3  ;;  %p155_p9 = scmp.lt.s32.totalorder %s3080_s14, 3 }
   0xc   : > { %s3153_s22 = scalar_select %p97_p7, %s3068_s11, %s99_s18  }
   0xd   : > { %p156_p10 = pnand %p2656_p6, %p155_p9 }
   0xf   : > { %159 = sbr.rel (%p156_p10) target bundleno = 748 (0x2ec), region = 28 }
  0x14   : > { %v326_v0 = vld [vmem:[%s4431_s1] sm:$0x3]  ;;  %vm456_vm0 = vcmask 1041408   ;;  %p187_p11 = scmp.lt.s32.totalorder %s3072_s12, 1  ;;  %v2772_v2 = vld [vmem:[%s4431_s1 + $0x4] sm:$0x3] }
  0x15   : > { %v458_v1 = vsel %vm456_vm0, %v326_v0, 0  ;;  %v2789_v3 = vld [vmem:[%s4431_s1 + $0x6] sm:$0x3]  ;;  %v1420_v4 = vsel %vm456_vm0, %v2772_v2, 0  ;;  %v2739_v6 = vld [vmem:[%s4431_s1 + $0x2] sm:$0x3] }
  0x16   : > { %2925 = vmatpush.bf16.msra.mxu1 %v458_v1  ;;  %2926 = vmatpush.bf16.msra.mxu2 %v458_v1  ;;  %s188_s29 = scalar_select %p187_p11, %s3072_s12, 1  ;;  %v1554_v5 = vsel %vm456_vm0, %v2789_v3, 0  ;;  %v1067_v7 = vsel %vm456_vm0, %v2739_v6, 0  ;;  %v2810_v8 = vld [vmem:[%s4431_s1 + $0x8] sm:$0x3]  ;;  %vm407_vm1 = vcmask 31744  }
  0x17   : > { %2927 = vmatpush.bf16.msra.mxu3 %v458_v1  ;;  %467 = vmatpush.bf16.msra.mxu0 %v458_v1  ;;  %v1710_v9 = vsel %vm456_vm0, %v2810_v8, 0  ;;  %v2845_v26 = vld [vmem:[%s4431_s1 + $0xc] sm:$0x3]  ;;  %v2866_v27 = vld [vmem:[%s4431_s1 + $0xe] sm:$0x3]  ;;  %vm1206_vm4 = vcmask 1042432  }
  0x18   : > { %s2928_s6 = smul.u32 216, %s188_s29  ;;  %v2828_v28 = vld [vmem:[%s4431_s1 + $0xa] sm:$0x3]  ;;  %v1984_v29 = vsel %vm456_vm0, %v2845_v26, 0  ;;  %v2140_v30 = vsel %vm456_vm0, %v2866_v27, 0  ;;  %vm1207_vm5 = vcmask 1046532  }
  0x19   : > { %v1850_v31 = vsel %vm456_vm0, %v2828_v28, 0  ;;  %v2884_v32 = vld [vmem:[%s4431_s1 + $0x10] sm:$0x3]  ;;  %vm581_vm2 = vsmask.f32 3328  ;;  %vm3289_vm7 = vmor %vm1206_vm4, %vm1207_vm5  ;;  %vm207_vm8 = vcmask 261120  }
  0x1a   : > { %1429 = vmatpush.bf16.msrb.mxu2 %v1420_v4  ;;  %1076 = vmatpush.bf16.msrb.mxu1 %v1067_v7  ;;  %s3180_s15 = scalar_lea.vmem %s4430_s0, %s2928_s6  ;;  %v2280_v33 = vsel %vm456_vm0, %v2884_v32, 0  ;;  %vm582_vm3 = vsmask.f32 7440  ;;  %s184_s28 = sand.u32 1, %s3064_s10  }
  0x1b   : > { %1563 = vmatpush.bf16.msrb.mxu3 %v1554_v5  ;;  %1719 = vmatpush.bf16.msrb.mxu0 %v1710_v9  ;;  %v3183_v10 = vld [vmem:[%s3180_s15 + $0x30] sm:$0xff]  ;;  %v3186_v11 = vld [vmem:[%s3180_s15 + $0x60] sm:$0xff]  ;;  %v3214_v18 = vld [vmem:[%s3180_s15 + $0x48] sm:$0xff]  ;;  %s2657_s29 = sshll.u32 %s184_s28, 8  ;;  %s2924_s3 = sshll.u32 %s3072_s12, 8 }
  0x1c   : > { %v2918_v12 = vld [vmem:[%s3180_s15 + $0x90] sm:$0xff]  ;;  %v2906_v13 = vld [vmem:[%s3180_s15] sm:$0xff]  ;;  %2727 = vmatmul.msk.bf16.vlgmr.msra.gmra.mxu1 %vm407_vm1, %v3183_v10  ;;  %2731 = vmatmul.msk.bf16.vlgmr.msra.gmra.mxu2 %vm407_vm1, %v3186_v11  ;;  %v2916_v19 = vld [vmem:[%s3180_s15 + $0x78] sm:$0xff]  ;;  %s4194_s30 = scalar_lea.vmem [#allocation3], %s2657_s29  ;;  %s2548_s6 = scalar_lea.hbm %s4432_s2, %s2924_s3 }
  0x1d   : > { %2735 = vmatmul.msk.bf16.vlgmr.msra.gmra.mxu3 %vm407_vm1, %v2918_v12  ;;  %2723 = vmatmul.msk.bf16.vlgmr.msra.gmra.mxu0 %vm407_vm1, %v2906_v13  ;;  %v3197_v14 = vld [vmem:[%s3180_s15 + $0x3c] sm:$0xff]  ;;  %v3200_v15 = vld [vmem:[%s3180_s15 + $0x6c] sm:$0xff]  ;;  %v3228_v23 = vld [vmem:[%s3180_s15 + $0x4] sm:$0xf]  ;;  %s2549_s7 = sshll.u32 %s4194_s30, 4  ;;  %s2551_s8 = sshll.u32 %s2548_s6, 4  ;;  %s2550_s7 = int_to_ptr.vmem [resolvable:$true] %s2549_s7  ;;  %s2552_s8 = int_to_ptr.hbm [resolvable:$true] %s2551_s8 }
  0x1e   : > { %v2919_v16 = vld [vmem:[%s3180_s15 + $0x9c] sm:$0xff]  ;;  %v3204_v17 = vld [vmem:[%s3180_s15 + $0xc] sm:$0xff]  ;;  %1993 = vmatpush.bf16.msra.mxu2 %v1984_v29  ;;  %v594_v36 = vshll.u32 %v3228_v23, 16  ;;  %v598_v37 = vshrl.u32 %v3228_v23, 16  ;;  %1859 = vmatpush.bf16.msra.mxu1 %v1850_v31  ;;  %v242_v42 = vld [vmem:[%s3180_s15 + $0x8] sm:$0x1] }
  0x1f   : > { %v2920_v20 = vld [vmem:[%s3180_s15 + $0xa8] sm:$0xff]  ;;  %v3219_v21 = vld [vmem:[%s3180_s15 + $0x18] sm:$0xff]  ;;  %v3222_v22 = vld [vmem:[%s3180_s15] sm:$0xf]  ;;  %2149 = vmatpush.bf16.msra.mxu3 %v2140_v30  ;;  %2289 = vmatpush.bf16.msra.mxu0 %v2280_v33  ;;  %v604_v52 = vshll.u32 %v242_v42, 16  ;;  %v1211_v57 = vrot.slane %v3228_v23, 5 }
  0x20   : > { %v3231_v24 = vld [vmem:[%s3180_s15 + $0xc] sm:$0xf]  ;;  %v3234_v25 = vld [vmem:[%s3180_s15 + $0x10] sm:$0xf]  ;;  %v585_v34 = vshrl.u32 %v3222_v22, 16  ;;  %v588_v35 = vshll.u32 %v3222_v22, 16  ;;  %vm3284_vm6 = vmor %vm581_vm2, %vm582_vm3 }
  0x21   : > { %v609_v38 = vshrl.u32 %v3231_v24, 16  ;;  %v612_v39 = vshll.u32 %v3231_v24, 16  ;;  %v618_v40 = vshll.u32 %v3234_v25, 16  ;;  %v622_v41 = vshrl.u32 %v3234_v25, 16  ;;  %v3265_v51 = vld [vmem:[%s3180_s15 + $0x14] sm:$0x1] }
  0x22   : > { %v587_v43 = vrot.slane %v585_v34, 4  ;;  %v590_v44 = vrot.slane %v588_v35, 5  ;;  %v596_v45 = vrot.slane %v594_v36, 5  ;;  %v600_v46 = vrot.slane %v598_v37, 4  ;;  %v3268_v53 = vld [vmem:[%s3180_s15 + $0x54] sm:$0xff]  ;;  %v2917_v54 = vld [vmem:[%s3180_s15 + $0x84] sm:$0xff] }
  0x23   : > { %v611_v47 = vrot.slane %v609_v38, 4  ;;  %v614_v48 = vrot.slane %v612_v39, 5  ;;  %v620_v49 = vrot.slane %v618_v40, 5  ;;  %v624_v50 = vrot.slane %v622_v41, 4  ;;  %v2921_v58 = vld [vmem:[%s3180_s15 + $0xb4] sm:$0xff]  ;;  %v3274_v59 = vld [vmem:[%s3180_s15 + $0x24] sm:$0xff] }
  0x24   : > { %v591_v55 = vor.u32 %v590_v44, %v587_v43  ;;  %v601_v56 = vor.u32 %v600_v46, %v596_v45  ;;  %v628_v62 = vshll.u32 %v3265_v51, 16  ;;  %v606_v63 = vrot.slane %v604_v52, 5  ;;  %v3294_v12 = vld [vmem:[%s3180_s15 + $0x18] sm:$0xf]  ;;  %v3297_v13 = vld [vmem:[%s3180_s15 + $0x1c] sm:$0xf] }
  0x25   : > { %v615_v60 = vor.u32 %v614_v48, %v611_v47  ;;  %v625_v61 = vor.u32 %v624_v50, %v620_v49  ;;  %v2756_v2 = vrot.slane %v3222_v22, 9  ;;  %v1213_v3 = vrot.slane %v1211_v57, 4  ;;  %v3316_v41 = vld [vmem:[%s3180_s15 + $0x20] sm:$0x1]  ;;  %s2536_s12 = scalar_lea.sflag [#allocation4], %s184_s28  ;;  %s3022_s23 = scalar_lea.hbm %s4432_s2, 512 }
  0x26   : > { %v592_v0 = vrot.slane %v591_v55, 4  ;;  %v602_v1 = vrot.slane %v601_v56, 4  ;;  %v1214_v5 = vrot.slane %v242_v42, 5  ;;  %v630_v8 = vrot.slane %v628_v62, 5 }
  0x27   : > { %v616_v6 = vrot.slane %v615_v60, 4  ;;  %v626_v7 = vrot.slane %v625_v61, 4  ;;  %v633_v27 = vshrl.u32 %v3294_v12, 16  ;;  %v636_v28 = vshll.u32 %v3294_v12, 16 }
  0x28   : > { %v1215_v22 = vsel %vm3289_vm7, %v1213_v3, %v1214_v5  ;;  %v642_v29 = vshll.u32 %v3297_v13, 16  ;;  %v646_v30 = vshrl.u32 %v3297_v13, 16  ;;  %v652_v48 = vshll.u32 %v3316_v41, 16 }
  0x29   : > { %v621_v23 = vsel %vm3284_vm6, %v616_v6, %v620_v49  ;;  %v631_v26 = vsel %vm3284_vm6, %v626_v7, %v630_v8  ;;  %v1324_v34 = vunpack.c.l.b16 %v1215_v22  ;;  %v635_v37 = vrot.slane %v633_v27, 4 }
  0x2a   : > { %v972_v35 = vunpack.c.l.b16 %v621_v23  ;;  %v973_v36 = vunpack.c.l.b16 %v631_v26  ;;  %v638_v38 = vrot.slane %v636_v28, 5  ;;  %v644_v39 = vrot.slane %v642_v29, 5 }
  0x2b   : > { %v648_v40 = vrot.slane %v646_v30, 4  ;;  %v2757_v49 = vrot.slane %v3231_v24, 9  ;;  %v1221_v52 = vrot.slane %v3265_v51, 5  ;;  %v654_v56 = vrot.slane %v652_v48, 5 }
  0x2c   : > { %2728 = vmatmul.msk.bf16.gmra.mxu1 %vm407_vm1, %v3197_v14  ;;  %2732 = vmatmul.msk.bf16.gmra.mxu2 %vm407_vm1, %v3200_v15  ;;  %v1003_v44 = vpack.c.b16 %v973_v36, %v972_v35  ;;  %v639_v46 = vor.u32 %v638_v38, %v635_v37  ;;  %v2758_v28 = vrot.slane %v3294_v12, 9  ;;  %v1228_v30 = vrot.slane %v3316_v41, 5  ;;  %v3369_v12 = vld [vmem:[%s3180_s15 + $0x34] sm:$0xf] }
  0x2d   : > { %2736 = vmatmul.msk.bf16.gmra.mxu3 %vm407_vm1, %v2919_v16  ;;  %2724 = vmatmul.msk.bf16.gmra.mxu0 %vm407_vm1, %v3204_v17  ;;  %v597_v16 = vsel %vm3284_vm6, %v592_v0, %v596_v45  ;;  %v1218_v45 = vrot.slane %v3234_v25, 5  ;;  %v649_v47 = vor.u32 %v648_v40, %v644_v39  ;;  %v690_v40 = vshll.u32 %v3369_v12, 16 }
  0x2e   : > { %v970_v31 = vunpack.c.l.b16 %v597_v16  ;;  %v640_v25 = vrot.slane %v639_v46, 4  ;;  %v3346_v16 = vld [vmem:[%s3180_s15 + $0x2c] sm:$0x1]  ;;  %v694_v41 = vshrl.u32 %v3369_v12, 16 }
  0x2f   : > { %v1220_v50 = vrot.slane %v1218_v45, 4  ;;  %v650_v55 = vrot.slane %v649_v47, 4  ;;  %v676_v27 = vshll.u32 %v3346_v16, 16  ;;  %v692_v48 = vrot.slane %v690_v40, 5 }
  0x30   : > { %v645_v62 = vsel %vm3284_vm6, %v640_v25, %v644_v39 }
  0x31   : > { %v1222_v24 = vsel %vm3289_vm7, %v1220_v50, %v1221_v52  ;;  %v974_v5 = vunpack.c.l.b16 %v645_v62  ;;  %v3401_v52 = vld [vmem:[%s3180_s15 + $0x38] sm:$0x1] }
  0x3c   : > { %2729 = vmatmul.msk.bf16.gmra.mxu1 %vm407_vm1, %v3214_v18  ;;  %2733 = vmatmul.msk.bf16.gmra.mxu2 %vm407_vm1, %v2916_v19  ;;  %v607_v19 = vsel %vm3284_vm6, %v602_v1, %v606_v63  ;;  %v655_v63 = vsel %vm3284_vm6, %v650_v55, %v654_v56  ;;  %v1326_v1 = vunpack.c.l.b16 %v1222_v24  ;;  %v1235_v24 = vrot.slane %v3346_v16, 5 }
  0x3d   : > { %2737 = vmatmul.msk.bf16.gmra.mxu3 %vm407_vm1, %v2920_v20  ;;  %2725 = vmatmul.msk.bf16.gmra.mxu0 %vm407_vm1, %v3219_v21  ;;  %v1212_v20 = vsel %vm3289_vm7, %v2756_v2, %v1211_v57  ;;  %v971_v32 = vunpack.c.l.b16 %v607_v19  ;;  %v3331_v57 = vld [vmem:[%s3180_s15 + $0x28] sm:$0xf]  ;;  %v975_v6 = vunpack.c.l.b16 %v655_v63 }
  0x3e   : > { %v1323_v33 = vunpack.c.l.b16 %v1212_v20  ;;  %v666_v51 = vshll.u32 %v3331_v57, 16  ;;  %v670_v61 = vshrl.u32 %v3331_v57, 16  ;;  %v1225_v20 = vrot.slane %v3297_v13, 5 }
  0x3f   : > { %v1002_v42 = vpack.c.b16 %v971_v32, %v970_v31  ;;  %v3351_v23 = vpack.c.b16 %v975_v6, %v974_v5  ;;  %v678_v32 = vrot.slane %v676_v27, 5  ;;  %v1232_v50 = vrot.slane %v3331_v57, 5 }
  0x40   : > { %v1355_v43 = vpack.c.b16 %v1324_v34, %v1323_v33  ;;  %v668_v7 = vrot.slane %v666_v51, 5  ;;  %v672_v8 = vrot.slane %v670_v61, 4  ;;  %v1227_v29 = vrot.slane %v1225_v20, 4  ;;  %v3366_v34 = vld [vmem:[%s3180_s15 + $0x30] sm:$0xf] }
  0x41   : > { %v3082_v33 = vmov 0.0   ;;  %v681_v38 = vshrl.u32 %v3366_v34, 16  ;;  %v684_v39 = vshll.u32 %v3366_v34, 16  ;;  %v700_v57 = vshll.u32 %v3401_v52, 16  ;;  %v3436_v51 = vld [vmem:[%s3180_s15 + $0x40] sm:$0xf] }
  0x42   : > { %v673_v26 = vor.u32 %v672_v8, %v668_v7  ;;  %216 = vst.msk [vmem:[#allocation2 + $0x40] sm:$0xff] %vm207_vm8, %v3082_v33  ;;  %v1229_v35 = vsel %vm3289_vm7, %v1227_v29, %v1228_v30  ;;  %v718_v5 = vshrl.u32 %v3436_v51, 16  ;;  %v3467_v30 = vld [vmem:[%s3180_s15 + $0x44] sm:$0x1] }
  0x43   : > { %208 = vst.msk [vmem:[#allocation2] sm:$0xff] %vm207_vm8, %v3082_v33  ;;  %v683_v46 = vrot.slane %v681_v38, 4  ;;  %v686_v47 = vrot.slane %v684_v39, 5  ;;  %v702_v63 = vrot.slane %v700_v57, 5  ;;  %v1242_v38 = vrot.slane %v3401_v52, 5 }
  0x44   : > { %v674_v13 = vrot.slane %v673_v26, 4  ;;  %209 = vst.msk [vmem:[#allocation2 + $0x8] sm:$0xff] %vm207_vm8, %v3082_v33  ;;  %v720_v27 = vrot.slane %v718_v5, 4 }
  0x45   : > { %210 = vst.msk [vmem:[#allocation2 + $0x10] sm:$0xff] %vm207_vm8, %v3082_v33  ;;  %v687_v56 = vor.u32 %v686_v47, %v683_v46 }
  0x46   : > { %v679_v37 = vsel %vm3284_vm6, %v674_v13, %v678_v32  ;;  %211 = vst.msk [vmem:[#allocation2 + $0x18] sm:$0xff] %vm207_vm8, %v3082_v33 }
  0x47   : > { %212 = vst.msk [vmem:[#allocation2 + $0x20] sm:$0xff] %vm207_vm8, %v3082_v33  ;;  %v688_v61 = vrot.slane %v687_v56, 4 }
  0x48   : > { %213 = vst.msk [vmem:[#allocation2 + $0x28] sm:$0xff] %vm207_vm8, %v3082_v33 }
  0x49   : > { %214 = vst.msk [vmem:[#allocation2 + $0x30] sm:$0xff] %vm207_vm8, %v3082_v33  ;;  %v693_v6 = vsel %vm3284_vm6, %v688_v61, %v692_v48 }
  0x4a   : > { %215 = vst.msk [vmem:[#allocation2 + $0x38] sm:$0xff] %vm207_vm8, %v3082_v33 }
  0x4b   : > { %217 = vst.msk [vmem:[#allocation2 + $0x48] sm:$0xff] %vm207_vm8, %v3082_v33 }
  0x4c   : > { %2730 = vmatmul.msk.bf16.gmra.mxu1 %vm407_vm1, %v3268_v53  ;;  %2734 = vmatmul.msk.bf16.gmra.mxu2 %vm407_vm1, %v2917_v54  ;;  %v3328_v54 = vld [vmem:[%s3180_s15 + $0x24] sm:$0xf]  ;;  %218 = vst.msk [vmem:[#allocation2 + $0x50] sm:$0xff] %vm207_vm8, %v3082_v33 }
  0x4d   : > { %2738 = vmatmul.msk.bf16.gmra.mxu3 %vm407_vm1, %v2921_v58  ;;  %2726 = vmatmul.msk.bf16.gmra.mxu0 %vm407_vm1, %v3274_v59  ;;  %v657_v58 = vshrl.u32 %v3328_v54, 16  ;;  %v660_v60 = vshll.u32 %v3328_v54, 16  ;;  %219 = vst.msk [vmem:[#allocation2 + $0x58] sm:$0xff] %vm207_vm8, %v3082_v33 }
  0x4e   : > { %220 = vst.msk [vmem:[#allocation2 + $0x60] sm:$0xff] %vm207_vm8, %v3082_v33 }
  0x4f   : > { %v659_v2 = vrot.slane %v657_v58, 4  ;;  %v662_v3 = vrot.slane %v660_v60, 5  ;;  %v2759_v60 = vrot.slane %v3328_v54, 9  ;;  %221 = vst.msk [vmem:[#allocation2 + $0x68] sm:$0xff] %vm207_vm8, %v3082_v33  ;;  %v3433_v54 = vld [vmem:[%s3180_s15 + $0x3c] sm:$0xf] }
  0x50   : > { %222 = vst.msk [vmem:[#allocation2 + $0x70] sm:$0xff] %vm207_vm8, %v3082_v33 }
  0x51   : > { %v663_v22 = vor.u32 %v662_v3, %v659_v2  ;;  %223 = vst.msk [vmem:[#allocation2 + $0x78] sm:$0xff] %vm207_vm8, %v3082_v33  ;;  %v708_v2 = vshll.u32 %v3433_v54, 16  ;;  %v714_v3 = vshll.u32 %v3436_v51, 16 }
  0x52   : > { %224 = vst.msk [vmem:[#allocation2 + $0x80] sm:$0xff] %vm207_vm8, %v3082_v33 }
  0x53   : > { %v664_v31 = vrot.slane %v663_v22, 4  ;;  %225 = vst.msk [vmem:[#allocation2 + $0x88] sm:$0xff] %vm207_vm8, %v3082_v33  ;;  %v710_v22 = vrot.slane %v708_v2, 5  ;;  %v716_v26 = vrot.slane %v714_v3, 5 }
  0x54   : > { %226 = vst.msk [vmem:[#allocation2 + $0x90] sm:$0xff] %vm207_vm8, %v3082_v33 }
  0x55   : > { %v669_v36 = vsel %vm3284_vm6, %v664_v31, %v668_v7  ;;  %227 = vst.msk [vmem:[#allocation2 + $0x98] sm:$0xff] %vm207_vm8, %v3082_v33  ;;  %v1239_v31 = vrot.slane %v3369_v12, 5  ;;  %v2760_v12 = vrot.slane %v3366_v34, 9  ;;  %v3502_v34 = vld [vmem:[%s3180_s15 + $0x48] sm:$0xf] }
  0x56   : > { %228 = vst.msk [vmem:[#allocation2 + $0xa0] sm:$0xff] %vm207_vm8, %v3082_v33  ;;  %v729_v46 = vshrl.u32 %v3502_v34, 16 }
  0x57   : > { %229 = vst.msk [vmem:[#allocation2 + $0xa8] sm:$0xff] %vm207_vm8, %v3082_v33 }
  0x58   : > { %230 = vst.msk [vmem:[#allocation2 + $0xb0] sm:$0xff] %vm207_vm8, %v3082_v33 }
  0x59   : > { %231 = vst.msk [vmem:[#allocation2 + $0xb8] sm:$0xff] %vm207_vm8, %v3082_v33 }
  0x5a   : > { %232 = vst.msk [vmem:[#allocation2 + $0xc0] sm:$0xff] %vm207_vm8, %v3082_v33 }
  0x5b   : > { %233 = vst.msk [vmem:[#allocation2 + $0xc8] sm:$0xff] %vm207_vm8, %v3082_v33 }
  0x5c   : > { %2740 = vmatmul.msk.bf16.vlgmr.msrb.gmra.mxu1 %vm407_vm1, %v1002_v42  ;;  %2773 = vmatmul.msk.bf16.vlgmr.msrb.gmra.mxu2 %vm407_vm1, %v1355_v43  ;;  %v1328_v43 = vunpack.c.l.b16 %v1229_v35  ;;  %234 = vst.msk [vmem:[#allocation2 + $0xd0] sm:$0xff] %vm207_vm8, %v3082_v33  ;;  %v724_v35 = vshll.u32 %v3467_v30, 16 }
  0x5d   : > { %2794 = vmatmul.msk.bf16.vlgmr.msrb.gmra.mxu3 %vm407_vm1, %v3204_v17  ;;  %2811 = vmatmul.msk.bf16.vlgmr.msrb.gmra.mxu0 %vm407_vm1, %v1003_v44  ;;  %v1219_v17 = vsel %vm3289_vm7, %v2757_v49, %v1218_v45  ;;  %v977_v45 = vunpack.c.l.b16 %v679_v37  ;;  %v696_v49 = vrot.slane %v694_v41, 4  ;;  %235 = vst.msk [vmem:[#allocation2 + $0xd8] sm:$0xff] %vm207_vm8, %v3082_v33  ;;  %v1241_v37 = vrot.slane %v1239_v31, 4 }
  0x5e   : > { %v1325_v0 = vunpack.c.l.b16 %v1219_v17  ;;  %v1234_v17 = vrot.slane %v1232_v50, 4  ;;  %236 = vst.msk [vmem:[#allocation2 + $0xe0] sm:$0xff] %vm207_vm8, %v3082_v33  ;;  %v726_v41 = vrot.slane %v724_v35, 5 }
  0x5f   : > { %v697_v58 = vor.u32 %v696_v49, %v692_v48  ;;  %237 = vst.msk [vmem:[#allocation2 + $0xe8] sm:$0xff] %vm207_vm8, %v3082_v33 }
  0x60   : > { %v3348_v19 = vpack.c.b16 %v1326_v1, %v1325_v0  ;;  %v1233_v0 = vsel %vm3289_vm7, %v2759_v60, %v1232_v50  ;;  %v705_v1 = vshrl.u32 %v3433_v54, 16  ;;  %238 = vst.msk [vmem:[#allocation2 + $0xf0] sm:$0xff] %vm207_vm8, %v3082_v33 }
  0x61   : > { %v698_v62 = vrot.slane %v697_v58, 4  ;;  %v1329_v8 = vunpack.c.l.b16 %v1233_v0  ;;  %239 = vst.msk [vmem:[#allocation2 + $0xf8] sm:$0xff] %vm207_vm8, %v3082_v33  ;;  %v732_v33 = vshll.u32 %v3502_v34, 16  ;;  %v731_v58 = vrot.slane %v729_v46, 4 }
  0x63   : > { %v703_v7 = vsel %vm3284_vm6, %v698_v62, %v702_v63  ;;  %v734_v57 = vrot.slane %v732_v33, 5  ;;  %v1246_v62 = vrot.slane %v3436_v51, 5  ;;  %v2761_v51 = vrot.slane %v3433_v54, 9  ;;  %v3572_v33 = vld [vmem:[%s3180_s15 + $0x5c] sm:$0x1] }
  0x64   : > { %v979_v29 = vunpack.c.l.b16 %v703_v7 }
  0x65   : > { %v1248_v5 = vrot.slane %v1246_v62, 4 }
  0x6c   : > { %2741 = vmatmul.msk.bf16.gmra.mxu1 %vm407_vm1, %v1003_v44  ;;  %2774 = vmatmul.msk.bf16.gmra.mxu2 %vm407_vm1, %v3348_v19  ;;  %v976_v44 = vunpack.c.l.b16 %v669_v36 }
  0x6d   : > { %2795 = vmatmul.msk.bf16.gmra.mxu3 %vm407_vm1, %v3219_v21  ;;  %2812 = vmatmul.msk.bf16.gmra.mxu0 %vm407_vm1, %v3351_v23  ;;  %v1226_v21 = vsel %vm3289_vm7, %v2758_v28, %v1225_v20  ;;  %v707_v20 = vrot.slane %v705_v1, 4  ;;  %v978_v28 = vunpack.c.l.b16 %v693_v6  ;;  %v1249_v6 = vrot.slane %v3467_v30, 5 }
  0x6e   : > { %v1327_v42 = vunpack.c.l.b16 %v1226_v21  ;;  %v3409_v55 = vpack.c.b16 %v977_v45, %v976_v44  ;;  %v721_v21 = vor.u32 %v720_v27, %v716_v26  ;;  %v1243_v44 = vsel %vm3289_vm7, %v1241_v37, %v1242_v38 }
  0x6f   : > { %v711_v32 = vor.u32 %v710_v22, %v707_v20  ;;  %v3479_v36 = vpack.c.b16 %v979_v29, %v978_v28  ;;  %v1332_v50 = vunpack.c.l.b16 %v1243_v44  ;;  %v3545_v22 = vld [vmem:[%s3180_s15 + $0x54] sm:$0xf]  ;;  %v1250_v28 = vsel %vm3289_vm7, %v1248_v5, %v1249_v6 }
  0x70   : > { %v3405_v25 = vpack.c.b16 %v1328_v43, %v1327_v42  ;;  %v722_v40 = vrot.slane %v721_v21, 4  ;;  %v3505_v42 = vld [vmem:[%s3180_s15 + $0x4c] sm:$0xf]  ;;  %v1240_v43 = vsel %vm3289_vm7, %v2760_v12, %v1239_v31  ;;  %v756_v21 = vshll.u32 %v3545_v22, 16 }
  0x71   : > { %v712_v39 = vrot.slane %v711_v32, 4  ;;  %v738_v47 = vshll.u32 %v3505_v42, 16  ;;  %v742_v48 = vshrl.u32 %v3505_v42, 16  ;;  %v1331_v49 = vunpack.c.l.b16 %v1240_v43 }
  0x72   : > { %v727_v45 = vsel %vm3284_vm6, %v722_v40, %v726_v41  ;;  %v753_v32 = vshrl.u32 %v3545_v22, 16  ;;  %v1334_v38 = vunpack.c.l.b16 %v1250_v28  ;;  %v758_v43 = vrot.slane %v756_v21, 5 }
  0x73   : > { %v981_v56 = vunpack.c.l.b16 %v727_v45  ;;  %v740_v60 = vrot.slane %v738_v47, 5  ;;  %v3522_v61 = vpack.c.b16 %v1332_v50, %v1331_v49  ;;  %v1253_v46 = vrot.slane %v3505_v42, 5 }
  0x74   : > { %v755_v41 = vrot.slane %v753_v32, 4  ;;  %v2762_v42 = vrot.slane %v3502_v34, 9 }
  0x7c   : > { %2742 = vmatmul.msk.bf16.gmra.mxu1 %vm407_vm1, %v3351_v23  ;;  %2775 = vmatmul.msk.bf16.gmra.mxu2 %vm407_vm1, %v3405_v25 }
  0x7d   : > { %2796 = vmatmul.msk.bf16.gmra.mxu3 %vm407_vm1, %v3274_v59  ;;  %2813 = vmatmul.msk.bf16.gmra.mxu0 %vm407_vm1, %v3409_v55  ;;  %v1236_v59 = vsel %vm3289_vm7, %v1234_v17, %v1235_v24  ;;  %v744_v17 = vrot.slane %v742_v48, 4  ;;  %v3520_v24 = vld [vmem:[%s3180_s15 + $0x50] sm:$0x1] }
  0x7e   : > { %v1330_v16 = vunpack.c.l.b16 %v1236_v59  ;;  %v735_v59 = vor.u32 %v734_v57, %v731_v58  ;;  %v748_v2 = vshll.u32 %v3520_v24, 16  ;;  %v772_v57 = vshll.u32 %v3572_v33, 16 }
  0x7f   : > { %v745_v1 = vor.u32 %v744_v17, %v740_v60  ;;  %v1256_v17 = vrot.slane %v3520_v24, 5 }
  0x80   : > { %v3474_v13 = vpack.c.b16 %v1330_v16, %v1329_v8  ;;  %v736_v7 = vrot.slane %v735_v59, 4  ;;  %v750_v16 = vrot.slane %v748_v2, 5  ;;  %v3599_v59 = vld [vmem:[%s3180_s15 + $0x64] sm:$0xf]  ;;  %v774_v2 = vrot.slane %v772_v57, 5 }
  0x81   : > { %v746_v8 = vrot.slane %v745_v1, 4 }
  0x82   : > { %v741_v29 = vsel %vm3284_vm6, %v736_v7, %v740_v60  ;;  %v1255_v60 = vrot.slane %v1253_v46, 4 }
  0x83   : > { %v751_v30 = vsel %vm3284_vm6, %v746_v8, %v750_v16  ;;  %v786_v8 = vshll.u32 %v3599_v59, 16  ;;  %v790_v16 = vshrl.u32 %v3599_v59, 16 }
  0x84   : > { %v983_v40 = vunpack.c.l.b16 %v751_v30  ;;  %v1257_v5 = vsel %vm3289_vm7, %v1255_v60, %v1256_v17 }
  0x85   : > { %v1336_v21 = vunpack.c.l.b16 %v1257_v5 }
  0x8c   : > { %2743 = vmatmul.msk.bf16.gmra.mxu1 %vm407_vm1, %v3409_v55  ;;  %2776 = vmatmul.msk.bf16.gmra.mxu2 %vm407_vm1, %v3474_v13 }
  0x8d   : > { %2797 = vmatmul.msk.bf16.gmra.mxu3 %vm407_vm1, %v3183_v10  ;;  %2814 = vmatmul.msk.bf16.gmra.mxu0 %vm407_vm1, %v3479_v36  ;;  %v717_v10 = vsel %vm3284_vm6, %v712_v39, %v716_v26  ;;  %v3548_v26 = vld [vmem:[%s3180_s15 + $0x58] sm:$0xf]  ;;  %v982_v39 = vunpack.c.l.b16 %v741_v29 }
  0x8e   : > { %v980_v52 = vunpack.c.l.b16 %v717_v10  ;;  %v762_v35 = vshll.u32 %v3548_v26, 16  ;;  %v766_v12 = vshrl.u32 %v3548_v26, 16 }
  0x8f   : > { %v3580_v50 = vpack.c.b16 %v983_v40, %v982_v39 }
  0x90   : > { %v3527_v0 = vpack.c.b16 %v981_v56, %v980_v52  ;;  %v764_v44 = vrot.slane %v762_v35, 5  ;;  %v768_v10 = vrot.slane %v766_v12, 4  ;;  %v759_v56 = vor.u32 %v758_v43, %v755_v41  ;;  %v3622_v41 = vld [vmem:[%s3180_s15 + $0x68] sm:$0x1] }
  0x91   : > { %4460 = vst [vmem:[#allocation10_spill] sm:$0xff] %v3580_v50  ;;  %v796_v57 = vshll.u32 %v3622_v41, 16 }
  0x92   : > { %4456 = vst [vmem:[#allocation6_spill] sm:$0xff] %v3527_v0  ;;  %v769_v58 = vor.u32 %v768_v10, %v764_v44  ;;  %v760_v34 = vrot.slane %v759_v56, 4  ;;  %v1260_v10 = vrot.slane %v3548_v26, 5  ;;  %v1263_v26 = vrot.slane %v3572_v33, 5 }
  0x93   : > { %v798_v5 = vrot.slane %v796_v57, 5 }
  0x94   : > { %v770_v1 = vrot.slane %v769_v58, 4  ;;  %v765_v29 = vsel %vm3284_vm6, %v760_v34, %v764_v44  ;;  %v2763_v34 = vrot.slane %v3545_v22, 9  ;;  %v3652_v22 = vld [vmem:[%s3180_s15 + $0x70] sm:$0xf] }
  0x95   : > { %v984_v39 = vunpack.c.l.b16 %v765_v29 }
  0x96   : > { %v775_v30 = vsel %vm3284_vm6, %v770_v1, %v774_v2  ;;  %v1262_v1 = vrot.slane %v1260_v10, 4  ;;  %v1261_v33 = vsel %vm3289_vm7, %v2763_v34, %v1260_v10 }
  0x97   : > { %v985_v40 = vunpack.c.l.b16 %v775_v30 }
  0x99   : > { %v3525_v63 = vpop.f32.mrf.mxu1  ;;  %v3634_v60 = vpack.c.b16 %v985_v40, %v984_v39  ;;  %v1337_v39 = vunpack.c.l.b16 %v1261_v33  ;;  %v1267_v33 = vrot.slane %v3599_v59, 5 }
  0x9a   : > { %v3530_v3 = vpop.f32.mrf.mxu0 }
  0x9b   : > { %4464 = vst [vmem:[#allocation14_spill] sm:$0xff] %v3634_v60  ;;  %v1269_v59 = vrot.slane %v1267_v33, 4 }
  0x9c   : > { %2744 = vmatmul.msk.bf16.gmra.mxu1 %vm407_vm1, %v3479_v36  ;;  %2777 = vmatmul.msk.bf16.gmra.mxu2 %vm407_vm1, %v3522_v61 }
  0x9d   : > { %2798 = vmatmul.msk.bf16.gmra.mxu3 %vm407_vm1, %v3197_v14  ;;  %2815 = vmatmul.msk.bf16.gmra.mxu0 %vm407_vm1, %v3527_v0  ;;  %v1247_v14 = vsel %vm3289_vm7, %v2761_v51, %v1246_v62  ;;  %v3596_v62 = vld [vmem:[%s3180_s15 + $0x60] sm:$0xf]  ;;  %v1254_v51 = vsel %vm3289_vm7, %v2762_v42, %v1253_v46 }
  0x9e   : > { %v1333_v37 = vunpack.c.l.b16 %v1247_v14  ;;  %v780_v7 = vshll.u32 %v3596_v62, 16  ;;  %v1335_v32 = vunpack.c.l.b16 %v1254_v51 }
  0x9f   : > { %v3542_v20 = vpop.f32.mrf.mxu2 }
  0xa0   : > { %v3550_v27 = vpop.f32.mrf.mxu3  ;;  %v3576_v48 = vpack.c.b16 %v1334_v38, %v1333_v37  ;;  %v782_v12 = vrot.slane %v780_v7, 5  ;;  %v788_v37 = vrot.slane %v786_v8, 5  ;;  %v792_v38 = vrot.slane %v790_v16, 4 }
  0xa1   : > { %4457 = vst [vmem:[#allocation7_spill] sm:$0xff] %v3550_v27  ;;  %v3552_v54 = vpop.f32.mrf.mxu1  ;;  %v3629_v44 = vpack.c.b16 %v1336_v21, %v1335_v32  ;;  %v1264_v16 = vsel %vm3289_vm7, %v1262_v1, %v1263_v26  ;;  %v3675_v1 = vld [vmem:[%s3180_s15 + $0x74] sm:$0x1] }
  0xa2   : > { %v3562_v31 = vpop.f32.mrf.mxu0  ;;  %4459 = vst [vmem:[#allocation9_spill] sm:$0xff] %v3576_v48  ;;  %v793_v58 = vor.u32 %v792_v38, %v788_v37  ;;  %v1338_v40 = vunpack.c.l.b16 %v1264_v16 }
  0xa3   : > { %4463 = vst [vmem:[#allocation13_spill] sm:$0xff] %v3629_v44 }
  0xa4   : > { %v794_v51 = vrot.slane %v793_v58, 4 }
  0xa6   : > { %v799_v29 = vsel %vm3284_vm6, %v794_v51, %v798_v5  ;;  %v3681_v51 = vpack.c.b16 %v1338_v40, %v1337_v39 }
  0xa7   : > { %v3568_v45 = vpop.f32.mrf.mxu2 }
  0xa8   : > { %v3574_v47 = vpop.f32.mrf.mxu3  ;;  %4468 = vst [vmem:[#allocation18_spill] sm:$0xff] %v3681_v51 }
  0xa9   : > { %4458 = vst [vmem:[#allocation8_spill] sm:$0xff] %v3574_v47  ;;  %v3578_v49 = vpop.f32.mrf.mxu1  ;;  %v3731_v47 = vld [vmem:[%s3180_s15 + $0x80] sm:$0x1] }
  0xaa   : > { %v3582_v52 = vpop.f32.mrf.mxu0 }
  0xac   : > { %2745 = vmatmul.msk.bf16.gmra.mxu1 %vm407_vm1, %v3527_v0  ;;  %2778 = vmatmul.msk.bf16.gmra.mxu2 %vm407_vm1, %v3576_v48 }
  0xad   : > { %2799 = vmatmul.msk.bf16.gmra.mxu3 %vm407_vm1, %v3214_v18  ;;  %2816 = vmatmul.msk.bf16.gmra.mxu0 %vm407_vm1, %v3580_v50  ;;  %v777_v18 = vshrl.u32 %v3596_v62, 16 }
  0xaf   : > { %v3601_v24 = vpop.f32.mrf.mxu2  ;;  %v779_v35 = vrot.slane %v777_v18, 4  ;;  %v3649_v18 = vld [vmem:[%s3180_s15 + $0x6c] sm:$0xf] }
  0xb0   : > { %v3607_v6 = vpop.f32.mrf.mxu3  ;;  %v801_v32 = vshrl.u32 %v3649_v18, 16  ;;  %v804_v21 = vshll.u32 %v3649_v18, 16 }
  0xb1   : > { %4461 = vst [vmem:[#allocation11_spill] sm:$0xff] %v3607_v6  ;;  %v3613_v14 = vpop.f32.mrf.mxu1  ;;  %v783_v56 = vor.u32 %v782_v12, %v779_v35  ;;  %v810_v35 = vshll.u32 %v3652_v22, 16  ;;  %v814_v12 = vshrl.u32 %v3652_v22, 16  ;;  %v1274_v6 = vrot.slane %v3652_v22, 5 }
  0xb2   : > { %v3615_v28 = vpop.f32.mrf.mxu0  ;;  %v806_v58 = vrot.slane %v804_v21, 5  ;;  %v1270_v21 = vrot.slane %v3622_v41, 5  ;;  %v2765_v22 = vrot.slane %v3649_v18, 9 }
  0xb3   : > { %v784_v2 = vrot.slane %v783_v56, 4  ;;  %v803_v56 = vrot.slane %v801_v32, 4  ;;  %v812_v57 = vrot.slane %v810_v35, 5  ;;  %v816_v34 = vrot.slane %v814_v12, 4 }
  0xb4   : > { %v2764_v35 = vrot.slane %v3596_v62, 9  ;;  %v1271_v62 = vsel %vm3289_vm7, %v1269_v59, %v1270_v21  ;;  %v294_v21 = vld [vmem:[#allocation2] sm:$0xff]  ;;  %v1276_v27 = vrot.slane %v1274_v6, 4 }
  0xb5   : > { %v807_v16 = vor.u32 %v806_v58, %v803_v56  ;;  %v3707_v56 = vld [vmem:[%s3180_s15 + $0x7c] sm:$0xf] }
  0xb7   : > { %v3624_v43 = vpop.f32.mrf.mxu2  ;;  %v808_v12 = vrot.slane %v807_v16, 4 }
  0xb8   : > { %v3627_v46 = vpop.f32.mrf.mxu3 }
  0xb9   : > { %4462 = vst [vmem:[#allocation12_spill] sm:$0xff] %v3627_v46  ;;  %v3632_v42 = vpop.f32.mrf.mxu1  ;;  %v1340_v46 = vunpack.c.l.b16 %v1271_v62 }
  0xba   : > { %v3636_v17 = vpop.f32.mrf.mxu0 }
  0xbc   : > { %2746 = vmatmul.msk.bf16.gmra.mxu1 %vm407_vm1, %v3580_v50  ;;  %2779 = vmatmul.msk.bf16.gmra.mxu2 %vm407_vm1, %v3629_v44  ;;  %v549_v44 = vadd.f32 %v3530_v3, %v294_v21  ;;  %v1277_v3 = vrot.slane %v3675_v1, 5  ;;  %v295_v21 = vld [vmem:[#allocation2 + $0x8] sm:$0xff] }
  0xbd   : > { %2800 = vmatmul.msk.bf16.gmra.mxu3 %vm407_vm1, %v3268_v53  ;;  %2817 = vmatmul.msk.bf16.gmra.mxu0 %vm407_vm1, %v3634_v60  ;;  %v789_v53 = vsel %vm3284_vm6, %v784_v2, %v788_v37  ;;  %v987_v37 = vunpack.c.l.b16 %v799_v29  ;;  %v820_v29 = vshll.u32 %v3675_v1, 16 }
  0xbe   : > { %v986_v10 = vunpack.c.l.b16 %v789_v53  ;;  %v817_v53 = vor.u32 %v816_v34, %v812_v57  ;;  %v813_v34 = vsel %vm3284_vm6, %v808_v12, %v812_v57 }
  0xbf   : > { %v3654_v7 = vpop.f32.mrf.mxu2  ;;  %v822_v40 = vrot.slane %v820_v29, 5  ;;  %v988_v59 = vunpack.c.l.b16 %v813_v34 }
  0xc0   : > { %v3656_v8 = vpop.f32.mrf.mxu3  ;;  %v3683_v5 = vpack.c.b16 %v987_v37, %v986_v10  ;;  %v818_v39 = vrot.slane %v817_v53, 4  ;;  %v3704_v37 = vld [vmem:[%s3180_s15 + $0x78] sm:$0xf] }
  0xc1   : > { %4465 = vst [vmem:[#allocation15_spill] sm:$0xff] %v3656_v8  ;;  %v3666_v30 = vpop.f32.mrf.mxu1  ;;  %v825_v29 = vshrl.u32 %v3704_v37, 16 }
  0xc2   : > { %v3672_v38 = vpop.f32.mrf.mxu0  ;;  %4469 = vst [vmem:[#allocation19_spill] sm:$0xff] %v3683_v5  ;;  %v823_v16 = vsel %vm3284_vm6, %v818_v39, %v822_v40 }
  0xc3   : > { %v827_v57 = vrot.slane %v825_v29, 4 }
  0xc7   : > { %v3677_v26 = vpop.f32.mrf.mxu2 }
  0xc8   : > { %4466 = vst [vmem:[#allocation16_spill] sm:$0xff] %v3677_v26  ;;  %v3679_v2 = vpop.f32.mrf.mxu3 }
  0xc9   : > { %4467 = vst [vmem:[#allocation17_spill] sm:$0xff] %v3679_v2  ;;  %v3685_v8 = vpop.f32.mrf.mxu1  ;;  %v834_v2 = vshll.u32 %v3707_v56, 16 }
  0xca   : > { %v3689_v32 = vpop.f32.mrf.mxu0 }
  0xcc   : > { %2747 = vmatmul.msk.bf16.gmra.mxu1 %vm407_vm1, %v3634_v60  ;;  %2780 = vmatmul.msk.bf16.gmra.mxu2 %vm407_vm1, %v3681_v51  ;;  %v989_v51 = vunpack.c.l.b16 %v823_v16  ;;  %v836_v60 = vrot.slane %v834_v2, 5 }
  0xcd   : > { %2801 = vmatmul.msk.bf16.gmra.mxu3 %vm407_vm1, %v3186_v11  ;;  %2818 = vmatmul.msk.bf16.gmra.mxu0 %vm407_vm1, %v3683_v5  ;;  %v1268_v11 = vsel %vm3289_vm7, %v2764_v35, %v1267_v33  ;;  %v838_v33 = vshrl.u32 %v3707_v56, 16 }
  0xce   : > { %v1339_v35 = vunpack.c.l.b16 %v1268_v11  ;;  %v3738_v34 = vpack.c.b16 %v989_v51, %v988_v59 }
  0xcf   : > { %v3701_v10 = vpop.f32.mrf.mxu2  ;;  %v840_v39 = vrot.slane %v838_v33, 4  ;;  %v844_v33 = vshll.u32 %v3731_v47, 16 }
  0xd0   : > { %4470 = vst [vmem:[#allocation20_spill] sm:$0xff] %v3701_v10  ;;  %v3709_v58 = vpop.f32.mrf.mxu3  ;;  %v3736_v11 = vpack.c.b16 %v1340_v46, %v1339_v35  ;;  %v3748_v46 = vld [vmem:[%s3180_s15 + $0x84] sm:$0xf]  ;;  %v550_v35 = vadd.f32 %v3562_v31, %v295_v21 }
  0xd1   : > { %4471 = vst [vmem:[#allocation21_spill] sm:$0xff] %v3709_v58  ;;  %v3711_v41 = vpop.f32.mrf.mxu1  ;;  %v828_v58 = vshll.u32 %v3704_v37, 16  ;;  %v841_v29 = vor.u32 %v840_v39, %v836_v60  ;;  %v846_v1 = vrot.slane %v844_v33, 5  ;;  %v849_v39 = vshrl.u32 %v3748_v46, 16 }
  0xd2   : > { %v3721_v53 = vpop.f32.mrf.mxu0  ;;  %4474 = vst [vmem:[#allocation24_spill] sm:$0xff] %v3736_v11 }
  0xd3   : > { %v830_v12 = vrot.slane %v828_v58, 5  ;;  %v842_v51 = vrot.slane %v841_v29, 4 }
  0xd5   : > { %v831_v16 = vor.u32 %v830_v12, %v827_v57  ;;  %v1275_v57 = vsel %vm3289_vm7, %v2765_v22, %v1274_v6  ;;  %v1278_v12 = vsel %vm3289_vm7, %v1276_v27, %v1277_v3  ;;  %v847_v27 = vsel %vm3284_vm6, %v842_v51, %v846_v1 }
  0xd6   : > { %v1341_v22 = vunpack.c.l.b16 %v1275_v57  ;;  %v851_v3 = vrot.slane %v849_v39, 4  ;;  %v991_v26 = vunpack.c.l.b16 %v847_v27 }
  0xd7   : > { %v3727_v40 = vpop.f32.mrf.mxu2  ;;  %v832_v18 = vrot.slane %v831_v16, 4 }
  0xd8   : > { %4472 = vst [vmem:[#allocation22_spill] sm:$0xff] %v3727_v40  ;;  %v3734_v50 = vpop.f32.mrf.mxu3 }
  0xd9   : > { %4473 = vst [vmem:[#allocation23_spill] sm:$0xff] %v3734_v50  ;;  %v1078_v62 = vpop.f32.mrf.mxu1  ;;  %v852_v50 = vshll.u32 %v3748_v46, 16  ;;  %v837_v6 = vsel %vm3284_vm6, %v832_v18, %v836_v60  ;;  %v1281_v18 = vrot.slane %v3707_v56, 5  ;;  %v1284_v56 = vrot.slane %v3731_v47, 5  ;;  %v3798_v47 = vld [vmem:[%s3180_s15 + $0x94] sm:$0xf] }
  0xda   : > { %v1158_v58 = vadd.f32 %v1078_v62, %v549_v44  ;;  %v1721_v2 = vpop.f32.mrf.mxu0  ;;  %v3755_v44 = vld [vmem:[%s3180_s15 + $0x88] sm:$0xf]  ;;  %v990_v10 = vunpack.c.l.b16 %v837_v6  ;;  %v2987_v6 = vld [vmem:[%s3180_s15 + $0x78] sm:$0xff] }
  0xdb   : > { %v862_v16 = vshrl.u32 %v3755_v44, 16 }
  0xdc   : > { %2748 = vmatmul.msk.bf16.gmra.mxu1 %vm407_vm1, %v3683_v5  ;;  %2781 = vmatmul.msk.bf16.gmra.mxu2 %vm407_vm1, %v3736_v11  ;;  %v858_v11 = vshll.u32 %v3755_v44, 16  ;;  %v854_v5 = vrot.slane %v852_v50, 5 }
  0xdd   : > { %2802 = vmatmul.msk.bf16.gmra.mxu3 %vm407_vm1, %v3200_v15  ;;  %2819 = vmatmul.msk.bf16.gmra.mxu0 %vm407_vm1, %v3738_v34  ;;  %v864_v48 = vrot.slane %v862_v16, 4 }
  0xde   : > { %v860_v40 = vrot.slane %v858_v11, 5  ;;  %v855_v57 = vor.u32 %v854_v5, %v851_v3 }
  0xdf   : > { %v1431_v59 = vpop.f32.mrf.mxu2 }
  0xe0   : > { %v1511_v15 = vadd.f32 %v1431_v59, %v1158_v58  ;;  %v1565_v62 = vpop.f32.mrf.mxu3  ;;  %v1342_v58 = vunpack.c.l.b16 %v1278_v12  ;;  %v296_v59 = vld [vmem:[#allocation2 + $0x10] sm:$0xff]  ;;  %v865_v12 = vor.u32 %v864_v48, %v860_v40  ;;  %v856_v48 = vrot.slane %v855_v57, 4 }
  0xe1   : > { %v1080_v29 = vpop.f32.mrf.mxu1  ;;  %v882_v57 = vshll.u32 %v3798_v47, 16 }
  0xe2   : > { %v1645_v31 = vadd.f32 %v1565_v62, %v1511_v15  ;;  %v1159_v33 = vadd.f32 %v1080_v29, %v550_v35  ;;  %v1723_v21 = vpop.f32.mrf.mxu0  ;;  %v3773_v15 = vld [vmem:[%s3180_s15 + $0x8c] sm:$0x1]  ;;  %v551_v35 = vadd.f32 %v3582_v52, %v296_v59  ;;  %v3776_v60 = vpack.c.b16 %v1342_v58, %v1341_v22 }
  0xe3   : > { %v868_v50 = vshll.u32 %v3773_v15, 16  ;;  %v2766_v29 = vrot.slane %v3704_v37, 9  ;;  %v3795_v37 = vld [vmem:[%s3180_s15 + $0x90] sm:$0xf] }
  0xe4   : > { %v3770_v0 = vadd.f32 %v1721_v2, %v1645_v31  ;;  %v3780_v2 = vpack.c.b16 %v991_v26, %v990_v10  ;;  %v1283_v31 = vrot.slane %v1281_v18, 4  ;;  %v866_v26 = vrot.slane %v865_v12, 4 }
  0xe5   : > { %v870_v5 = vrot.slane %v868_v50, 5  ;;  %v1282_v58 = vsel %vm3289_vm7, %v2766_v29, %v1281_v18  ;;  %v886_v18 = vshrl.u32 %v3798_v47, 16 }
  0xe6   : > { %4475 = vst [vmem:[#allocation25_spill] sm:$0xff] %v3770_v0 }
  0xe7   : > { %v1433_v62 = vpop.f32.mrf.mxu2 }
  0xe8   : > { %v1512_v51 = vadd.f32 %v1433_v62, %v1159_v33  ;;  %v1567_v1 = vpop.f32.mrf.mxu3  ;;  %v297_v33 = vld [vmem:[#allocation2 + $0x18] sm:$0xff]  ;;  %v871_v62 = vsel %vm3284_vm6, %v866_v26, %v870_v5  ;;  %v884_v26 = vrot.slane %v882_v57, 5  ;;  %v888_v5 = vrot.slane %v886_v18, 4 }
  0xe9   : > { %v1083_v11 = vpop.f32.mrf.mxu1  ;;  %v552_v27 = vadd.f32 %v3615_v28, %v297_v33  ;;  %v876_v28 = vshll.u32 %v3795_v37, 16  ;;  %v1291_v57 = vrot.slane %v3773_v15, 5 }
  0xea   : > { %v1646_v39 = vadd.f32 %v1567_v1, %v1512_v51  ;;  %v1160_v16 = vadd.f32 %v1083_v11, %v551_v35  ;;  %v1726_v52 = vpop.f32.mrf.mxu0  ;;  %v861_v35 = vsel %vm3284_vm6, %v856_v48, %v860_v40  ;;  %v873_v1 = vshrl.u32 %v3795_v37, 16 }
  0xeb   : > { %v992_v29 = vunpack.c.l.b16 %v861_v35  ;;  %v993_v40 = vunpack.c.l.b16 %v871_v62  ;;  %v878_v48 = vrot.slane %v876_v28, 5  ;;  %v889_v35 = vor.u32 %v888_v5, %v884_v26 }
  0xec   : > { %2749 = vmatmul.msk.bf16.gmra.mxu1 %vm407_vm1, %v3738_v34  ;;  %2782 = vmatmul.msk.bf16.gmra.mxu2 %vm407_vm1, %v3776_v60  ;;  %v3788_v10 = vadd.f32 %v1723_v21, %v1646_v39  ;;  %v1285_v21 = vsel %vm3289_vm7, %v1283_v31, %v1284_v56  ;;  %v1343_v39 = vunpack.c.l.b16 %v1282_v58  ;;  %v298_v56 = vld [vmem:[#allocation2 + $0x20] sm:$0xff]  ;;  %v875_v33 = vrot.slane %v873_v1, 4 }
  0xed   : > { %2803 = vmatmul.msk.bf16.gmra.mxu3 %vm407_vm1, %v2987_v6  ;;  %2820 = vmatmul.msk.bf16.gmra.mxu0 %vm407_vm1, %v3780_v2  ;;  %v3816_v6 = vld [vmem:[%s3180_s15 + $0x98] sm:$0x1]  ;;  %v1288_v58 = vrot.slane %v3755_v44, 5 }
  0xee   : > { %4476 = vst [vmem:[#allocation26_spill] sm:$0xff] %v3788_v10  ;;  %v553_v10 = vadd.f32 %v3636_v17, %v298_v56  ;;  %v892_v62 = vshll.u32 %v3816_v6, 16  ;;  %v2767_v17 = vrot.slane %v3748_v46, 9 }
  0xef   : > { %v1436_v22 = vpop.f32.mrf.mxu2  ;;  %v1290_v44 = vrot.slane %v1288_v58, 4 }
  0xf0   : > { %v1513_v3 = vadd.f32 %v1436_v22, %v1160_v16  ;;  %v1570_v59 = vpop.f32.mrf.mxu3  ;;  %v1344_v16 = vunpack.c.l.b16 %v1285_v21  ;;  %v879_v21 = vor.u32 %v878_v48, %v875_v33  ;;  %v1289_v56 = vsel %vm3289_vm7, %v2767_v17, %v1288_v58 }
  0xf1   : > { %v1085_v51 = vpop.f32.mrf.mxu1  ;;  %v1292_v33 = vsel %vm3289_vm7, %v1290_v44, %v1291_v57 }
  0xf2   : > { %v1647_v12 = vadd.f32 %v1570_v59, %v1513_v3  ;;  %v1161_v50 = vadd.f32 %v1085_v51, %v552_v27  ;;  %v1728_v11 = vpop.f32.mrf.mxu0  ;;  %v3819_v27 = vpack.c.b16 %v1344_v16, %v1343_v39  ;;  %v894_v39 = vrot.slane %v892_v62, 5  ;;  %v3841_v16 = vld [vmem:[%s3180_s15 + $0x9c] sm:$0xf] }
  0xf4   : > { %v3813_v31 = vadd.f32 %v1726_v52, %v1647_v12  ;;  %v3822_v52 = vpack.c.b16 %v993_v40, %v992_v29  ;;  %v299_v12 = vld [vmem:[#allocation2 + $0x28] sm:$0xff]  ;;  %v3844_v29 = vld [vmem:[%s3180_s15 + $0xa0] sm:$0xf] }
  0xf5   : > { %v554_v15 = vadd.f32 %v3672_v38, %v299_v12  ;;  %v906_v58 = vshll.u32 %v3844_v29, 16  ;;  %v910_v62 = vshrl.u32 %v3844_v29, 16 }
  0xf6   : > { %4477 = vst [vmem:[#allocation27_spill] sm:$0xff] %v3813_v31 }
  0xf7   : > { %v1438_v22 = vpop.f32.mrf.mxu2 }
  0xf8   : > { %v1514_v0 = vadd.f32 %v1438_v22, %v1161_v50  ;;  %v1572_v3 = vpop.f32.mrf.mxu3  ;;  %v3834_v50 = vld [vmem:[%s3180_s15 + $0x84] sm:$0xff] }
  0xf9   : > { %v1088_v59 = vpop.f32.mrf.mxu1 }
  0xfa   : > { %v1648_v51 = vadd.f32 %v1572_v3, %v1514_v0  ;;  %v1162_v1 = vadd.f32 %v1088_v59, %v553_v10  ;;  %v1731_v28 = vpop.f32.mrf.mxu0  ;;  %v880_v0 = vrot.slane %v879_v21, 4  ;;  %v890_v10 = vrot.slane %v889_v35, 4 }
  0xfb   : > { %v897_v3 = vshrl.u32 %v3841_v16, 16  ;;  %v900_v59 = vshll.u32 %v3841_v16, 16 }
  0xfc   : > { %2750 = vmatmul.msk.bf16.gmra.mxu1 %vm407_vm1, %v3780_v2  ;;  %2783 = vmatmul.msk.bf16.gmra.mxu2 %vm407_vm1, %v3819_v27  ;;  %v3831_v18 = vadd.f32 %v1728_v11, %v1648_v51  ;;  %v885_v5 = vsel %vm3284_vm6, %v880_v0, %v884_v26  ;;  %v895_v22 = vsel %vm3284_vm6, %v890_v10, %v894_v39  ;;  %v1345_v51 = vunpack.c.l.b16 %v1289_v56  ;;  %v300_v26 = vld [vmem:[#allocation2 + $0x30] sm:$0xff] }
  0xfd   : > { %2804 = vmatmul.msk.bf16.gmra.mxu3 %vm407_vm1, %v3834_v50  ;;  %2821 = vmatmul.msk.bf16.gmra.mxu0 %vm407_vm1, %v3822_v52  ;;  %v994_v44 = vunpack.c.l.b16 %v885_v5  ;;  %v995_v57 = vunpack.c.l.b16 %v895_v22  ;;  %v899_v12 = vrot.slane %v897_v3, 4  ;;  %v902_v0 = vrot.slane %v900_v59, 5 }
  0xfe   : > { %4478 = vst [vmem:[#allocation28_spill] sm:$0xff] %v3831_v18  ;;  %v908_v10 = vrot.slane %v906_v58, 5  ;;  %v912_v39 = vrot.slane %v910_v62, 4  ;;  %v2768_v58 = vrot.slane %v3795_v37, 9  ;;  %v301_v62 = vld [vmem:[#allocation2 + $0x38] sm:$0xff] }
  0xff   : > { %v1441_v46 = vpop.f32.mrf.mxu2  ;;  %v903_v5 = vor.u32 %v902_v0, %v899_v12  ;;  %v3890_v37 = vld [vmem:[%s3180_s15 + $0xac] sm:$0xf] }
 0x100   : > { %v1515_v11 = vadd.f32 %v1441_v46, %v1162_v1  ;;  %v1575_v40 = vpop.f32.mrf.mxu3  ;;  %v1346_v1 = vunpack.c.l.b16 %v1292_v33  ;;  %v3868_v33 = vpack.c.b16 %v995_v57, %v994_v44  ;;  %v556_v57 = vadd.f32 %v3721_v53, %v301_v62  ;;  %v302_v62 = vld [vmem:[#allocation2 + $0x40] sm:$0xff] }
 0x101   : > { %v1090_v48 = vpop.f32.mrf.mxu1 }
 0x102   : > { %v1649_v38 = vadd.f32 %v1575_v40, %v1515_v11  ;;  %v1163_v21 = vadd.f32 %v1090_v48, %v554_v15  ;;  %v1733_v35 = vpop.f32.mrf.mxu0  ;;  %v1295_v15 = vrot.slane %v3798_v47, 5  ;;  %v3863_v11 = vld [vmem:[%s3180_s15 + $0xa4] sm:$0x1]  ;;  %v555_v40 = vadd.f32 %v3689_v32, %v300_v26 }
 0x103   : > { %v3866_v56 = vpack.c.b16 %v1346_v1, %v1345_v51  ;;  %v916_v47 = vshll.u32 %v3863_v11, 16  ;;  %v3878_v51 = vld [vmem:[%s3180_s15 + $0xa8] sm:$0xf]  ;;  %v3883_v1 = vld [vmem:[%s3180_s15 + $0x90] sm:$0xff] }
 0x104   : > { %v3859_v17 = vadd.f32 %v1731_v28, %v1649_v38  ;;  %v913_v38 = vor.u32 %v912_v39, %v908_v10  ;;  %v1297_v32 = vrot.slane %v1295_v15, 4  ;;  %4482 = vst [vmem:[#allocation32_spill] sm:$0xff] %v3883_v1  ;;  %v921_v39 = vshrl.u32 %v3878_v51, 16 }
 0x105   : > { %4480 = vst [vmem:[#allocation30_spill] sm:$0xff] %v3866_v56  ;;  %v918_v44 = vrot.slane %v916_v47, 5 }
 0x106   : > { %4479 = vst [vmem:[#allocation29_spill] sm:$0xff] %v3859_v17  ;;  %v914_v26 = vrot.slane %v913_v38, 4 }
 0x107   : > { %v1443_v46 = vpop.f32.mrf.mxu2 }
 0x108   : > { %v1516_v48 = vadd.f32 %v1443_v46, %v1163_v21  ;;  %v1577_v18 = vpop.f32.mrf.mxu3  ;;  %v1298_v21 = vrot.slane %v3816_v6, 5  ;;  %v904_v6 = vrot.slane %v903_v5, 4  ;;  %v934_v5 = vshrl.u32 %v3890_v37, 16 }
 0x109   : > { %v1093_v28 = vpop.f32.mrf.mxu1 }
 0x10a   : > { %v1650_v22 = vadd.f32 %v1577_v18, %v1516_v48  ;;  %v1164_v3 = vadd.f32 %v1093_v28, %v555_v40  ;;  %v1736_v59 = vpop.f32.mrf.mxu0  ;;  %v1299_v0 = vsel %vm3289_vm7, %v1297_v32, %v1298_v21  ;;  %v924_v48 = vshll.u32 %v3878_v51, 16 }
 0x10b   : > { %v930_v28 = vshll.u32 %v3890_v37, 16  ;;  %v923_v21 = vrot.slane %v921_v39, 4  ;;  %v936_v17 = vrot.slane %v934_v5, 4 }
 0x10c   : > { %2751 = vmatmul.msk.bf16.gmra.mxu1 %vm407_vm1, %v3822_v52  ;;  %2784 = vmatmul.msk.bf16.gmra.mxu2 %vm407_vm1, %v3866_v56  ;;  %v3880_v18 = vadd.f32 %v1733_v35, %v1650_v22  ;;  %v1296_v35 = vsel %vm3289_vm7, %v2768_v58, %v1295_v15  ;;  %v909_v15 = vsel %vm3284_vm6, %v904_v6, %v908_v10  ;;  %v1302_v6 = vrot.slane %v3844_v29, 5 }
 0x10d   : > { %2805 = vmatmul.msk.bf16.gmra.mxu3 %vm407_vm1, %v3883_v1  ;;  %2822 = vmatmul.msk.bf16.gmra.mxu0 %vm407_vm1, %v3868_v33  ;;  %v919_v58 = vsel %vm3284_vm6, %v914_v26, %v918_v44  ;;  %v1347_v32 = vunpack.c.l.b16 %v1296_v35  ;;  %v996_v31 = vunpack.c.l.b16 %v909_v15  ;;  %v1305_v29 = vrot.slane %v3863_v11, 5  ;;  %v3936_v11 = vld [vmem:[%s3180_s15 + $0xb8] sm:$0xf] }
 0x10e   : > { %4481 = vst [vmem:[#allocation31_spill] sm:$0xff] %v3880_v18  ;;  %v932_v18 = vrot.slane %v930_v28, 5  ;;  %v997_v56 = vunpack.c.l.b16 %v919_v58  ;;  %v3926_v58 = vld [vmem:[%s3180_s15 + $0x9c] sm:$0xff] }
 0x10f   : > { %v1446_v12 = vpop.f32.mrf.mxu2  ;;  %4485 = vst [vmem:[#allocation35_spill] sm:$0xff] %v3926_v58 }
 0x110   : > { %v1517_v46 = vadd.f32 %v1446_v12, %v1164_v3  ;;  %v1580_v40 = vpop.f32.mrf.mxu3  ;;  %v1348_v3 = vunpack.c.l.b16 %v1299_v0  ;;  %v926_v12 = vrot.slane %v924_v48, 5  ;;  %v937_v0 = vor.u32 %v936_v17, %v932_v18 }
 0x111   : > { %v1095_v22 = vpop.f32.mrf.mxu1  ;;  %v3915_v48 = vpack.c.b16 %v997_v56, %v996_v31 }
 0x112   : > { %v1651_v53 = vadd.f32 %v1580_v40, %v1517_v46  ;;  %v1165_v38 = vadd.f32 %v1095_v22, %v556_v57  ;;  %v1738_v47 = vpop.f32.mrf.mxu0  ;;  %v3908_v46 = vld [vmem:[%s3180_s15 + $0xb0] sm:$0x1]  ;;  %v557_v57 = vadd.f32 %v3525_v63, %v302_v62  ;;  %v3911_v10 = vpack.c.b16 %v1348_v3, %v1347_v32 }
 0x113   : > { %v927_v35 = vor.u32 %v926_v12, %v923_v21  ;;  %v940_v39 = vshll.u32 %v3908_v46, 16  ;;  %v2769_v22 = vrot.slane %v3841_v16, 9  ;;  %v938_v31 = vrot.slane %v937_v0, 4  ;;  %v3933_v16 = vld [vmem:[%s3180_s15 + $0xb4] sm:$0xf] }
 0x114   : > { %v3905_v1 = vadd.f32 %v1736_v59, %v1651_v53  ;;  %v1304_v53 = vrot.slane %v1302_v6, 4 }
 0x115   : > { %v928_v17 = vrot.slane %v927_v35, 4  ;;  %v942_v56 = vrot.slane %v940_v39, 5  ;;  %v1303_v21 = vsel %vm3289_vm7, %v2769_v22, %v1302_v6  ;;  %v954_v35 = vshll.u32 %v3936_v11, 16 }
 0x116   : > { %4483 = vst [vmem:[#allocation33_spill] sm:$0xff] %v3905_v1  ;;  %v1306_v12 = vsel %vm3289_vm7, %v1304_v53, %v1305_v29  ;;  %v958_v6 = vshrl.u32 %v3936_v11, 16  ;;  %v304_v29 = vld [vmem:[#allocation2 + $0x50] sm:$0xff] }
 0x117   : > { %v1448_v40 = vpop.f32.mrf.mxu2  ;;  %v559_v1 = vadd.f32 %v3578_v49, %v304_v29  ;;  %v2770_v49 = vrot.slane %v3878_v51, 9 }
 0x118   : > { %v1518_v26 = vadd.f32 %v1448_v40, %v1165_v38  ;;  %v1582_v44 = vpop.f32.mrf.mxu3  ;;  %v303_v38 = vld [vmem:[#allocation2 + $0x48] sm:$0xff]  ;;  %v943_v40 = vsel %vm3284_vm6, %v938_v31, %v942_v56  ;;  %v956_v31 = vrot.slane %v954_v35, 5  ;;  %v960_v56 = vrot.slane %v958_v6, 4  ;;  %v305_v6 = vld [vmem:[#allocation2 + $0x58] sm:$0xff] }
 0x119   : > { %v1098_v59 = vpop.f32.mrf.mxu1  ;;  %v558_v32 = vadd.f32 %v3552_v54, %v303_v38  ;;  %v948_v54 = vshll.u32 %v3933_v16, 16 }
 0x11a   : > { %v1652_v28 = vadd.f32 %v1582_v44, %v1518_v26  ;;  %v1166_v5 = vadd.f32 %v1098_v59, %v557_v57  ;;  %v1741_v63 = vpop.f32.mrf.mxu0  ;;  %v933_v57 = vsel %vm3284_vm6, %v928_v17, %v932_v18  ;;  %v945_v44 = vshrl.u32 %v3933_v16, 16 }
 0x11b   : > { %v998_v22 = vunpack.c.l.b16 %v933_v57  ;;  %v999_v18 = vunpack.c.l.b16 %v943_v40  ;;  %v950_v17 = vrot.slane %v948_v54, 5  ;;  %v961_v57 = vor.u32 %v960_v56, %v956_v31 }
 0x11c   : > { %2752 = vmatmul.msk.bf16.gmra.mxu1 %vm407_vm1, %v3868_v33  ;;  %2785 = vmatmul.msk.bf16.gmra.mxu2 %vm407_vm1, %v3911_v10  ;;  %v3923_v15 = vadd.f32 %v1738_v47, %v1652_v28  ;;  %v1349_v28 = vunpack.c.l.b16 %v1303_v21  ;;  %v947_v38 = vrot.slane %v945_v44, 4  ;;  %v1309_v21 = vrot.slane %v3890_v37, 5 }
 0x11d   : > { %2806 = vmatmul.msk.bf16.gmra.mxu3 %vm407_vm1, %v3926_v58  ;;  %2823 = vmatmul.msk.bf16.gmra.mxu0 %vm407_vm1, %v3915_v48 }
 0x11e   : > { %4484 = vst [vmem:[#allocation34_spill] sm:$0xff] %v3923_v15  ;;  %v1311_v37 = vrot.slane %v1309_v21, 4 }
 0x11f   : > { %v1451_v3 = vpop.f32.mrf.mxu2 }
 0x120   : > { %v1519_v47 = vadd.f32 %v1451_v3, %v1166_v5  ;;  %v1585_v62 = vpop.f32.mrf.mxu3  ;;  %v1350_v5 = vunpack.c.l.b16 %v1306_v12  ;;  %v3954_v3 = vld [vmem:[%s3180_s15 + $0xbc] sm:$0x1]  ;;  %v951_v12 = vor.u32 %v950_v17, %v947_v38 }
 0x121   : > { %v1100_v26 = vpop.f32.mrf.mxu1  ;;  %v964_v40 = vshll.u32 %v3954_v3, 16 }
 0x122   : > { %v1653_v0 = vadd.f32 %v1585_v62, %v1519_v47  ;;  %v1167_v39 = vadd.f32 %v1100_v26, %v558_v32  ;;  %v1743_v59 = vpop.f32.mrf.mxu0  ;;  %v3957_v32 = vpack.c.b16 %v1350_v5, %v1349_v28  ;;  %v3979_v28 = vld [vmem:[%s3180_s15 + $0xc0] sm:$0xf]  ;;  %v3982_v5 = vld [vmem:[%s3180_s15 + $0xc4] sm:$0xf] }
 0x123   : > { %4486 = vst [vmem:[#allocation36_spill] sm:$0xff] %v3979_v28 }
 0x124   : > { %v3951_v53 = vadd.f32 %v1741_v63, %v1653_v0  ;;  %v3960_v63 = vpack.c.b16 %v999_v18, %v998_v22  ;;  %v3972_v0 = vld [vmem:[%s3180_s15 + $0xa8] sm:$0xff]  ;;  %v1310_v18 = vsel %vm3289_vm7, %v2770_v49, %v1309_v21  ;;  %v1687_v21 = vshll.u32 %v3982_v5, 16 }
 0x127   : > { %v1453_v15 = vpop.f32.mrf.mxu2 }
 0x128   : > { %v1520_v58 = vadd.f32 %v1453_v15, %v1167_v39  ;;  %v1587_v47 = vpop.f32.mrf.mxu3  ;;  %v1312_v15 = vrot.slane %v3908_v46, 5  ;;  %v966_v39 = vrot.slane %v964_v40, 5  ;;  %v560_v46 = vadd.f32 %v3613_v14, %v305_v6 }
 0x129   : > { %v1103_v62 = vpop.f32.mrf.mxu1  ;;  %v1691_v40 = vshrl.u32 %v3982_v5, 16 }
 0x12a   : > { %v1654_v26 = vadd.f32 %v1587_v47, %v1520_v58  ;;  %v1168_v44 = vadd.f32 %v1103_v62, %v559_v1  ;;  %v1746_v54 = vpop.f32.mrf.mxu0  ;;  %v952_v1 = vrot.slane %v951_v12, 4  ;;  %v962_v58 = vrot.slane %v961_v57, 4 }
 0x12b   : > { %v1313_v29 = vsel %vm3289_vm7, %v1311_v37, %v1312_v15  ;;  %v1678_v47 = vshrl.u32 %v3979_v28, 16  ;;  %v1681_v62 = vshll.u32 %v3979_v28, 16 }
 0x12c   : > { %2753 = vmatmul.msk.bf16.gmra.mxu1 %vm407_vm1, %v3915_v48  ;;  %2786 = vmatmul.msk.bf16.gmra.mxu2 %vm407_vm1, %v3957_v32  ;;  %v3969_v35 = vadd.f32 %v1743_v59, %v1654_v26  ;;  %v957_v17 = vsel %vm3284_vm6, %v952_v1, %v956_v31  ;;  %v967_v56 = vsel %vm3284_vm6, %v962_v58, %v966_v39  ;;  %v1351_v26 = vunpack.c.l.b16 %v1310_v18  ;;  %v306_v31 = vld [vmem:[#allocation2 + $0x60] sm:$0xff] }
 0x12d   : > { %2807 = vmatmul.msk.bf16.gmra.mxu3 %vm407_vm1, %v3972_v0  ;;  %2824 = vmatmul.msk.bf16.gmra.mxu0 %vm407_vm1, %v3960_v63  ;;  %v1000_v37 = vunpack.c.l.b16 %v957_v17  ;;  %v1001_v15 = vunpack.c.l.b16 %v967_v56  ;;  %v1680_v6 = vrot.slane %v1678_v47, 4  ;;  %v1683_v1 = vrot.slane %v1681_v62, 5 }
 0x12e   : > { %v1689_v58 = vrot.slane %v1687_v21, 5  ;;  %v1693_v39 = vrot.slane %v1691_v40, 4  ;;  %v4016_v40 = vld [vmem:[%s3180_s15 + $0xb4] sm:$0xff] }
 0x12f   : > { %v1456_v51 = vpop.f32.mrf.mxu2  ;;  %v1684_v17 = vor.u32 %v1683_v1, %v1680_v6 }
 0x130   : > { %v1521_v59 = vadd.f32 %v1456_v51, %v1168_v44  ;;  %v1590_v22 = vpop.f32.mrf.mxu3  ;;  %v1352_v44 = vunpack.c.l.b16 %v1313_v29  ;;  %v1316_v29 = vrot.slane %v3936_v11, 5  ;;  %v2771_v11 = vrot.slane %v3933_v16, 9 }
 0x131   : > { %v1105_v38 = vpop.f32.mrf.mxu1 }
 0x132   : > { %v1655_v14 = vadd.f32 %v1590_v22, %v1521_v59  ;;  %v1169_v12 = vadd.f32 %v1105_v38, %v560_v46  ;;  %v1748_v57 = vpop.f32.mrf.mxu0  ;;  %v4000_v59 = vld [vmem:[%s3180_s15 + $0xc8] sm:$0x1]  ;;  %v561_v46 = vadd.f32 %v3632_v42, %v306_v31  ;;  %v4003_v28 = vpack.c.b16 %v1352_v44, %v1351_v26 }
 0x133   : > { %v1697_v21 = vshll.u32 %v4000_v59, 16  ;;  %v1318_v26 = vrot.slane %v1316_v29, 4  ;;  %v1319_v44 = vrot.slane %v3954_v3, 5  ;;  %v1685_v31 = vrot.slane %v1684_v17, 4 }
 0x134   : > { %v3997_v49 = vadd.f32 %v1746_v54, %v1655_v14  ;;  %v4005_v54 = vpack.c.b16 %v1001_v15, %v1000_v37  ;;  %v1694_v14 = vor.u32 %v1693_v39, %v1689_v58 }
 0x135   : > { %v1699_v15 = vrot.slane %v1697_v21, 5  ;;  %v1690_v3 = vsel %vm3284_vm6, %v1685_v31, %v1689_v58 }
 0x136   : > { %v1695_v37 = vrot.slane %v1694_v14, 4  ;;  %v308_v14 = vld [vmem:[#allocation2 + $0x70] sm:$0xff]  ;;  %v1703_v21 = vunpack.c.l.b16 %v1690_v3 }
 0x137   : > { %v1458_v51 = vpop.f32.mrf.mxu2 }
 0x138   : > { %v1522_v22 = vadd.f32 %v1458_v51, %v1169_v12  ;;  %v1592_v38 = vpop.f32.mrf.mxu3  ;;  %v307_v12 = vld [vmem:[#allocation2 + $0x68] sm:$0xff]  ;;  %v1700_v17 = vsel %vm3284_vm6, %v1695_v37, %v1699_v15 }
 0x139   : > { %v1108_v18 = vpop.f32.mrf.mxu1 }
 0x13a   : > { %v1656_v56 = vadd.f32 %v1592_v38, %v1522_v22  ;;  %v1170_v47 = vadd.f32 %v1108_v18, %v561_v46  ;;  %v1751_v62 = vpop.f32.mrf.mxu0  ;;  %v1317_v46 = vsel %vm3289_vm7, %v2771_v11, %v1316_v29  ;;  %v1320_v22 = vsel %vm3289_vm7, %v1318_v26, %v1319_v44 }
 0x13b   : > { %v1704_v29 = vunpack.c.l.b16 %v1700_v17  ;;  %v563_v11 = vadd.f32 %v3685_v8, %v308_v14  ;;  %v309_v8 = vld [vmem:[#allocation2 + $0x78] sm:$0xff] }
 0x13c   : > { %2754 = vmatmul.msk.bf16.gmra.mxu1 %vm407_vm1, %v3960_v63  ;;  %2787 = vmatmul.msk.bf16.gmra.mxu2 %vm407_vm1, %v4003_v28  ;;  %v4013_v42 = vadd.f32 %v1748_v57, %v1656_v56  ;;  %v562_v57 = vadd.f32 %v3666_v30, %v307_v12  ;;  %v1353_v30 = vunpack.c.l.b16 %v1317_v46  ;;  %v1354_v56 = vunpack.c.l.b16 %v1320_v22 }
 0x13d   : > { %2808 = vmatmul.msk.bf16.gmra.mxu3 %vm407_vm1, %v4016_v40  ;;  %2825 = vmatmul.msk.bf16.gmra.mxu0 %vm407_vm1, %v4005_v54  ;;  %v4041_v58 = vpack.c.b16 %v1704_v29, %v1703_v21 }
 0x13f   : > { %v1461_v6 = vpop.f32.mrf.mxu2 }
 0x140   : > { %v1523_v1 = vadd.f32 %v1461_v6, %v1170_v47  ;;  %v1595_v39 = vpop.f32.mrf.mxu3  ;;  %v4036_v6 = vpack.c.b16 %v1354_v56, %v1353_v30 }
 0x141   : > { %v1110_v51 = vpop.f32.mrf.mxu1 }
 0x142   : > { %v1657_v38 = vadd.f32 %v1595_v39, %v1523_v1  ;;  %v1171_v16 = vadd.f32 %v1110_v51, %v562_v57  ;;  %v1753_v18 = vpop.f32.mrf.mxu0  ;;  %v4039_v1 = vld [vmem:[%s3180_s15 + $0xc0] sm:$0xff]  ;;  %v564_v51 = vadd.f32 %v3711_v41, %v309_v8  ;;  %v2993_v41 = vld [vmem:[%s3180_s15 + $0x18] sm:$0xff] }
 0x144   : > { %v4033_v47 = vadd.f32 %v1751_v62, %v1657_v38 }
 0x147   : > { %v1463_v12 = vpop.f32.mrf.mxu2 }
 0x148   : > { %v1524_v26 = vadd.f32 %v1463_v12, %v1171_v16  ;;  %v1597_v44 = vpop.f32.mrf.mxu3 }
 0x149   : > { %v1113_v57 = vpop.f32.mrf.mxu1 }
 0x14a   : > { %v1658_v31 = vadd.f32 %v1597_v44, %v1524_v26  ;;  %v1172_v37 = vadd.f32 %v1113_v57, %v563_v11  ;;  %v1756_v15 = vpop.f32.mrf.mxu0 }
 0x14c   : > { %2755 = vmatmul.msk.bf16.gmra.mxu1 %vm407_vm1, %v4005_v54  ;;  %2788 = vmatmul.msk.bf16.gmra.mxu2 %vm407_vm1, %v4036_v6  ;;  %v4047_v62 = vadd.f32 %v1753_v18, %v1658_v31  ;;  %v310_v18 = vld [vmem:[#allocation2 + $0x80] sm:$0xff]  ;;  %v311_v31 = vld [vmem:[#allocation2 + $0x88] sm:$0xff] }
 0x14d   : > { %2809 = vmatmul.msk.bf16.gmra.mxu3 %vm407_vm1, %v4039_v1  ;;  %2826 = vmatmul.msk.bf16.gmra.mxu0 %vm407_vm1, %v4041_v58  ;;  %v565_v14 = vadd.f32 %v3542_v20, %v310_v18 }
 0x14f   : > { %v1466_v39 = vpop.f32.mrf.mxu2 }
 0x150   : > { %v1525_v46 = vadd.f32 %v1466_v39, %v1172_v37  ;;  %v1600_v22 = vpop.f32.mrf.mxu3  ;;  %v566_v37 = vadd.f32 %v3568_v45, %v311_v31  ;;  %v2994_v45 = vld [vmem:[%s3180_s15 + $0x24] sm:$0xff] }
 0x151   : > { %v1115_v38 = vpop.f32.mrf.mxu1 }
 0x152   : > { %v1659_v16 = vadd.f32 %v1600_v22, %v1525_v46  ;;  %v1173_v3 = vadd.f32 %v1115_v38, %v564_v51  ;;  %v1758_v17 = vpop.f32.mrf.mxu0  ;;  %v312_v38 = vld [vmem:[#allocation2 + $0x90] sm:$0xff] }
 0x154   : > { %v4054_v30 = vadd.f32 %v1756_v15, %v1659_v16 }
 0x157   : > { %v1468_v56 = vpop.f32.mrf.mxu2 }
 0x158   : > { %v1526_v21 = vadd.f32 %v1468_v56, %v1173_v3  ;;  %v1602_v29 = vpop.f32.mrf.mxu3  ;;  %v567_v3 = vadd.f32 %v3601_v24, %v312_v38 }
 0x159   : > { %v1118_v12 = vpop.f32.mrf.mxu1 }
 0x15a   : > { %v1660_v11 = vadd.f32 %v1602_v29, %v1526_v21  ;;  %v1174_v26 = vadd.f32 %v1118_v12, %v565_v14  ;;  %v1761_v44 = vpop.f32.mrf.mxu0  ;;  %v313_v12 = vld [vmem:[#allocation2 + $0x98] sm:$0xff] }
 0x15c   : > { %2829 = vmatmul.msk.bf16.vlgmr.msra.gmra.mxu1 %vm407_vm1, %v3348_v19  ;;  %2850 = vmatmul.msk.bf16.vlgmr.msra.gmra.mxu2 %vm407_vm1, %v2993_v41  ;;  %v4061_v57 = vadd.f32 %v1758_v17, %v1660_v11  ;;  %v568_v11 = vadd.f32 %v3624_v43, %v313_v12  ;;  %v2995_v43 = vld [vmem:[%s3180_s15 + $0x30] sm:$0xff] }
 0x15d   : > { %2867 = vmatmul.msk.bf16.vlgmr.msra.gmra.mxu3 %vm407_vm1, %v3351_v23  ;;  %2885 = vmatmul.msk.bf16.vlgmr.msra.gmra.mxu0 %vm407_vm1, %v3405_v25 }
 0x15f   : > { %v1471_v20 = vpop.f32.mrf.mxu2 }
 0x160   : > { %v1527_v15 = vadd.f32 %v1471_v20, %v1174_v26  ;;  %v1605_v8 = vpop.f32.mrf.mxu3 }
 0x161   : > { %v1120_v39 = vpop.f32.mrf.mxu1 }
 0x162   : > { %v1661_v19 = vadd.f32 %v1605_v8, %v1527_v15  ;;  %v1175_v51 = vadd.f32 %v1120_v39, %v566_v37  ;;  %v1763_v46 = vpop.f32.mrf.mxu0  ;;  %v314_v15 = vld [vmem:[#allocation2 + $0xa0] sm:$0xff] }
 0x163   : > { %v569_v39 = vadd.f32 %v3654_v7, %v314_v15 }
 0x164   : > { %v4068_v22 = vadd.f32 %v1761_v44, %v1661_v19 }
 0x167   : > { %v1473_v16 = vpop.f32.mrf.mxu2 }
 0x168   : > { %v1528_v23 = vadd.f32 %v1473_v16, %v1175_v51  ;;  %v1607_v17 = vpop.f32.mrf.mxu3 }
 0x169   : > { %v1123_v18 = vpop.f32.mrf.mxu1 }
 0x16a   : > { %v1662_v56 = vadd.f32 %v1607_v17, %v1528_v23  ;;  %v1176_v14 = vadd.f32 %v1123_v18, %v567_v3  ;;  %v1766_v21 = vpop.f32.mrf.mxu0  ;;  %v315_v23 = vld [vmem:[#allocation2 + $0xa8] sm:$0xff]  ;;  %v4487_v17 = vld [vmem:[#allocation16_spill] sm:$0xff] }
 0x16b   : > { %v570_v18 = vadd.f32 %v4487_v17, %v315_v23 }
 0x16c   : > { %2830 = vmatmul.msk.bf16.gmra.mxu1 %vm407_vm1, %v3405_v25  ;;  %2851 = vmatmul.msk.bf16.gmra.mxu2 %vm407_vm1, %v2994_v45  ;;  %v4075_v29 = vadd.f32 %v1763_v46, %v1662_v56 }
 0x16d   : > { %2868 = vmatmul.msk.bf16.gmra.mxu3 %vm407_vm1, %v3409_v55  ;;  %2886 = vmatmul.msk.bf16.gmra.mxu0 %vm407_vm1, %v3474_v13 }
 0x16f   : > { %v1476_v24 = vpop.f32.mrf.mxu2 }
 0x170   : > { %v1529_v26 = vadd.f32 %v1476_v24, %v1176_v14  ;;  %v1610_v44 = vpop.f32.mrf.mxu3 }
 0x171   : > { %v1125_v41 = vpop.f32.mrf.mxu1 }
 0x172   : > { %v1663_v25 = vadd.f32 %v1610_v44, %v1529_v26  ;;  %v1177_v31 = vadd.f32 %v1125_v41, %v568_v11  ;;  %v1768_v20 = vpop.f32.mrf.mxu0  ;;  %v316_v11 = vld [vmem:[#allocation2 + $0xb0] sm:$0xff] }
 0x173   : > { %v4488_v44 = vld [vmem:[#allocation20_spill] sm:$0xff] }
 0x174   : > { %v4082_v37 = vadd.f32 %v1766_v21, %v1663_v25  ;;  %v571_v41 = vadd.f32 %v4488_v44, %v316_v11 }
 0x177   : > { %v1478_v8 = vpop.f32.mrf.mxu2 }
 0x178   : > { %v1530_v55 = vadd.f32 %v1478_v8, %v1177_v31  ;;  %v1612_v19 = vpop.f32.mrf.mxu3 }
 0x179   : > { %v1128_v51 = vpop.f32.mrf.mxu1 }
 0x17a   : > { %v1664_v46 = vadd.f32 %v1612_v19, %v1530_v55  ;;  %v1178_v38 = vadd.f32 %v1128_v51, %v569_v39  ;;  %v1771_v16 = vpop.f32.mrf.mxu0  ;;  %v2996_v39 = vld [vmem:[%s3180_s15 + $0x3c] sm:$0xff] }
 0x17b   : > { %v317_v19 = vld [vmem:[#allocation2 + $0xb8] sm:$0xff]  ;;  %v4489_v51 = vld [vmem:[#allocation6_spill] sm:$0xff] }
 0x17c   : > { %2831 = vmatmul.msk.bf16.gmra.mxu1 %vm407_vm1, %v3474_v13  ;;  %2852 = vmatmul.msk.bf16.gmra.mxu2 %vm407_vm1, %v2995_v43  ;;  %v4089_v3 = vadd.f32 %v1768_v20, %v1664_v46  ;;  %v4490_v46 = vld [vmem:[#allocation9_spill] sm:$0xff] }
 0x17d   : > { %2869 = vmatmul.msk.bf16.gmra.mxu3 %vm407_vm1, %v3479_v36  ;;  %2887 = vmatmul.msk.bf16.gmra.mxu0 %vm407_vm1, %v3522_v61 }
 0x17f   : > { %v1481_v7 = vpop.f32.mrf.mxu2 }
 0x180   : > { %v1531_v56 = vadd.f32 %v1481_v7, %v1178_v38  ;;  %v1615_v14 = vpop.f32.mrf.mxu3 }
 0x181   : > { %v1130_v21 = vpop.f32.mrf.mxu1 }
 0x182   : > { %v1665_v13 = vadd.f32 %v1615_v14, %v1531_v56  ;;  %v1179_v45 = vadd.f32 %v1130_v21, %v570_v18  ;;  %v1773_v12 = vpop.f32.mrf.mxu0  ;;  %v318_v21 = vld [vmem:[#allocation2 + $0xc0] sm:$0xff] }
 0x184   : > { %v4096_v24 = vadd.f32 %v1771_v16, %v1665_v13  ;;  %v4491_v16 = vld [vmem:[#allocation22_spill] sm:$0xff] }
 0x185   : > { %v572_v43 = vadd.f32 %v4491_v16, %v317_v19 }
 0x187   : > { %v1483_v26 = vpop.f32.mrf.mxu2 }
 0x188   : > { %v1532_v36 = vadd.f32 %v1483_v26, %v1179_v45  ;;  %v1617_v25 = vpop.f32.mrf.mxu3  ;;  %v4492_v45 = vld [vmem:[#allocation7_spill] sm:$0xff] }
 0x189   : > { %v1133_v31 = vpop.f32.mrf.mxu1 }
 0x18a   : > { %v1666_v20 = vadd.f32 %v1617_v25, %v1532_v36  ;;  %v1180_v15 = vadd.f32 %v1133_v31, %v571_v41  ;;  %v1776_v8 = vpop.f32.mrf.mxu0  ;;  %v2997_v31 = vld [vmem:[%s3180_s15 + $0x48] sm:$0xff] }
 0x18c   : > { %2832 = vmatmul.msk.bf16.gmra.mxu1 %vm407_vm1, %v3522_v61  ;;  %2853 = vmatmul.msk.bf16.gmra.mxu2 %vm407_vm1, %v2996_v39  ;;  %v4103_v55 = vadd.f32 %v1773_v12, %v1666_v20  ;;  %v573_v12 = vadd.f32 %v4492_v45, %v318_v21  ;;  %v4494_v39 = vld [vmem:[#allocation13_spill] sm:$0xff]  ;;  %v4496_v21 = vld [vmem:[#allocation11_spill] sm:$0xff] }
 0x18d   : > { %2870 = vmatmul.msk.bf16.gmra.mxu3 %vm407_vm1, %v4489_v51  ;;  %2888 = vmatmul.msk.bf16.gmra.mxu0 %vm407_vm1, %v4490_v46  ;;  %v4495_v51 = vld [vmem:[#allocation8_spill] sm:$0xff] }
 0x18f   : > { %v1486_v38 = vpop.f32.mrf.mxu2 }
 0x190   : > { %v1533_v23 = vadd.f32 %v1486_v38, %v1180_v15  ;;  %v1620_v7 = vpop.f32.mrf.mxu3  ;;  %v319_v15 = vld [vmem:[#allocation2 + $0xc8] sm:$0xff] }
 0x191   : > { %v1135_v17 = vpop.f32.mrf.mxu1  ;;  %v574_v38 = vadd.f32 %v4495_v51, %v319_v15  ;;  %v4497_v15 = vld [vmem:[#allocation14_spill] sm:$0xff]  ;;  %v4499_v51 = vld [vmem:[#allocation12_spill] sm:$0xff] }
 0x192   : > { %v1667_v61 = vadd.f32 %v1620_v7, %v1533_v23  ;;  %v1181_v18 = vadd.f32 %v1135_v17, %v572_v43  ;;  %v1778_v56 = vpop.f32.mrf.mxu0 }
 0x194   : > { %v4110_v14 = vadd.f32 %v1776_v8, %v1667_v61  ;;  %v4493_v8 = vld [vmem:[#allocation10_spill] sm:$0xff] }
 0x197   : > { %v1488_v13 = vpop.f32.mrf.mxu2 }
 0x198   : > { %v1534_v11 = vadd.f32 %v1488_v13, %v1181_v18  ;;  %v1622_v26 = vpop.f32.mrf.mxu3  ;;  %v320_v18 = vld [vmem:[#allocation2 + $0xd0] sm:$0xff] }
 0x199   : > { %v1138_v44 = vpop.f32.mrf.mxu1  ;;  %v575_v13 = vadd.f32 %v4496_v21, %v320_v18  ;;  %v4501_v21 = vld [vmem:[#allocation15_spill] sm:$0xff] }
 0x19a   : > { %v1668_v41 = vadd.f32 %v1622_v26, %v1534_v11  ;;  %v1182_v36 = vadd.f32 %v1138_v44, %v573_v12  ;;  %v1781_v25 = vpop.f32.mrf.mxu0 }
 0x19c   : > { %2833 = vmatmul.msk.bf16.gmra.mxu1 %vm407_vm1, %v4490_v46  ;;  %2854 = vmatmul.msk.bf16.gmra.mxu2 %vm407_vm1, %v2997_v31  ;;  %v4117_v20 = vadd.f32 %v1778_v56, %v1668_v41 }
 0x19d   : > { %2871 = vmatmul.msk.bf16.gmra.mxu3 %vm407_vm1, %v4493_v8  ;;  %2889 = vmatmul.msk.bf16.gmra.mxu0 %vm407_vm1, %v4494_v39  ;;  %v4498_v8 = vld [vmem:[#allocation18_spill] sm:$0xff] }
 0x19f   : > { %v1491_v19 = vpop.f32.mrf.mxu2 }
 0x1a0   : > { %v1535_v16 = vadd.f32 %v1491_v19, %v1182_v36  ;;  %v1625_v43 = vpop.f32.mrf.mxu3  ;;  %v2998_v36 = vld [vmem:[%s3180_s15 + $0x54] sm:$0xff] }
 0x1a1   : > { %v1140_v23 = vpop.f32.mrf.mxu1 }
 0x1a2   : > { %v1669_v46 = vadd.f32 %v1625_v43, %v1535_v16  ;;  %v1183_v7 = vadd.f32 %v1140_v23, %v574_v38  ;;  %v1783_v17 = vpop.f32.mrf.mxu0 }
 0x1a4   : > { %v4124_v61 = vadd.f32 %v1781_v25, %v1669_v46  ;;  %v321_v25 = vld [vmem:[#allocation2 + $0xd8] sm:$0xff] }
 0x1a5   : > { %v576_v38 = vadd.f32 %v4499_v51, %v321_v25  ;;  %v4504_v51 = vld [vmem:[#allocation24_spill] sm:$0xff] }
 0x1a7   : > { %v1493_v56 = vpop.f32.mrf.mxu2 }
 0x1a8   : > { %v1536_v45 = vadd.f32 %v1493_v56, %v1183_v7  ;;  %v1627_v12 = vpop.f32.mrf.mxu3 }
 0x1a9   : > { %v1143_v11 = vpop.f32.mrf.mxu1 }
 0x1aa   : > { %v1670_v26 = vadd.f32 %v1627_v12, %v1536_v45  ;;  %v1184_v44 = vadd.f32 %v1143_v11, %v575_v13  ;;  %v1786_v41 = vpop.f32.mrf.mxu0 }
 0x1ac   : > { %2834 = vmatmul.msk.bf16.gmra.mxu1 %vm407_vm1, %v4494_v39  ;;  %2855 = vmatmul.msk.bf16.gmra.mxu2 %vm407_vm1, %v2998_v36  ;;  %v4131_v31 = vadd.f32 %v1783_v17, %v1670_v26  ;;  %v322_v17 = vld [vmem:[#allocation2 + $0xe0] sm:$0xff] }
 0x1ad   : > { %2872 = vmatmul.msk.bf16.gmra.mxu3 %vm407_vm1, %v4497_v15  ;;  %2890 = vmatmul.msk.bf16.gmra.mxu0 %vm407_vm1, %v4498_v8  ;;  %v577_v13 = vadd.f32 %v4501_v21, %v322_v17 }
 0x1af   : > { %v1496_v19 = vpop.f32.mrf.mxu2 }
 0x1b0   : > { %v1537_v16 = vadd.f32 %v1496_v19, %v1184_v44  ;;  %v1630_v43 = vpop.f32.mrf.mxu3  ;;  %v2999_v44 = vld [vmem:[%s3180_s15 + $0x60] sm:$0xff]  ;;  %v4503_v19 = vld [vmem:[#allocation19_spill] sm:$0xff] }
 0x1b1   : > { %v1145_v23 = vpop.f32.mrf.mxu1 }
 0x1b2   : > { %v1671_v39 = vadd.f32 %v1630_v43, %v1537_v16  ;;  %v1185_v46 = vadd.f32 %v1145_v23, %v576_v38  ;;  %v1788_v7 = vpop.f32.mrf.mxu0  ;;  %v4505_v16 = vld [vmem:[#allocation17_spill] sm:$0xff] }
 0x1b4   : > { %v4138_v18 = vadd.f32 %v1786_v41, %v1671_v39  ;;  %v323_v41 = vld [vmem:[#allocation2 + $0xe8] sm:$0xff] }
 0x1b5   : > { %v578_v43 = vadd.f32 %v4505_v16, %v323_v41  ;;  %v4507_v16 = vld [vmem:[#allocation23_spill] sm:$0xff] }
 0x1b6   : > { %4500 = vst [vmem:[#allocation16_spill] sm:$0xff] %v4138_v18 }
 0x1b7   : > { %v1498_v56 = vpop.f32.mrf.mxu2 }
 0x1b8   : > { %v1538_v45 = vadd.f32 %v1498_v56, %v1185_v46  ;;  %v1632_v12 = vpop.f32.mrf.mxu3 }
 0x1b9   : > { %v1148_v11 = vpop.f32.mrf.mxu1 }
 0x1ba   : > { %v1672_v26 = vadd.f32 %v1632_v12, %v1538_v45  ;;  %v1186_v36 = vadd.f32 %v1148_v11, %v577_v13  ;;  %v1791_v15 = vpop.f32.mrf.mxu0  ;;  %v4506_v45 = vld [vmem:[#allocation21_spill] sm:$0xff] }
 0x1bc   : > { %2835 = vmatmul.msk.bf16.gmra.mxu1 %vm407_vm1, %v4498_v8  ;;  %2856 = vmatmul.msk.bf16.gmra.mxu2 %vm407_vm1, %v2999_v44  ;;  %v4145_v25 = vadd.f32 %v1788_v7, %v1672_v26  ;;  %v324_v7 = vld [vmem:[#allocation2 + $0xf0] sm:$0xff] }
 0x1bd   : > { %2873 = vmatmul.msk.bf16.gmra.mxu3 %vm407_vm1, %v4503_v19  ;;  %2891 = vmatmul.msk.bf16.gmra.mxu0 %vm407_vm1, %v4504_v51  ;;  %v579_v12 = vadd.f32 %v4506_v45, %v324_v7 }
 0x1be   : > { %4502 = vst [vmem:[#allocation20_spill] sm:$0xff] %v4145_v25 }
 0x1bf   : > { %v1501_v38 = vpop.f32.mrf.mxu2 }
 0x1c0   : > { %v1539_v23 = vadd.f32 %v1501_v38, %v1186_v36  ;;  %v1635_v39 = vpop.f32.mrf.mxu3  ;;  %v3000_v36 = vld [vmem:[%s3180_s15 + $0x6c] sm:$0xff] }
 0x1c1   : > { %v1150_v46 = vpop.f32.mrf.mxu1 }
 0x1c2   : > { %v1673_v8 = vadd.f32 %v1635_v39, %v1539_v23  ;;  %v1187_v17 = vadd.f32 %v1150_v46, %v578_v43  ;;  %v1793_v56 = vpop.f32.mrf.mxu0 }
 0x1c4   : > { %v4152_v21 = vadd.f32 %v1791_v15, %v1673_v8  ;;  %v325_v15 = vld [vmem:[#allocation2 + $0xf8] sm:$0xff] }
 0x1c5   : > { %v580_v43 = vadd.f32 %v4507_v16, %v325_v15 }
 0x1c7   : > { %v1503_v13 = vpop.f32.mrf.mxu2 }
 0x1c8   : > { %v1540_v11 = vadd.f32 %v1503_v13, %v1187_v17  ;;  %v1637_v26 = vpop.f32.mrf.mxu3 }
 0x1c9   : > { %v1153_v44 = vpop.f32.mrf.mxu1 }
 0x1ca   : > { %v1674_v19 = vadd.f32 %v1637_v26, %v1540_v11  ;;  %v1188_v25 = vadd.f32 %v1153_v44, %v579_v12  ;;  %v1796_v18 = vpop.f32.mrf.mxu0  ;;  %v3001_v26 = vld [vmem:[%s3180_s15 + $0x78] sm:$0xff] }
 0x1cc   : > { %2836 = vmatmul.msk.bf16.gmra.mxu1 %vm407_vm1, %v4504_v51  ;;  %2857 = vmatmul.msk.bf16.gmra.mxu2 %vm407_vm1, %v3000_v36  ;;  %v4159_v41 = vadd.f32 %v1793_v56, %v1674_v19 }
 0x1cd   : > { %2874 = vmatmul.msk.bf16.gmra.mxu3 %vm407_vm1, %v3738_v34  ;;  %2892 = vmatmul.msk.bf16.gmra.mxu0 %vm407_vm1, %v3776_v60 }
 0x1cf   : > { %v1506_v38 = vpop.f32.mrf.mxu2 }
 0x1d0   : > { %v1541_v23 = vadd.f32 %v1506_v38, %v1188_v25  ;;  %v1640_v39 = vpop.f32.mrf.mxu3 }
 0x1d1   : > { %v1155_v46 = vpop.f32.mrf.mxu1 }
 0x1d2   : > { %v1675_v51 = vadd.f32 %v1640_v39, %v1541_v23  ;;  %v1189_v8 = vadd.f32 %v1155_v46, %v580_v43  ;;  %v1798_v17 = vpop.f32.mrf.mxu0  ;;  %v4509_v23 = vld [vmem:[#allocation26_spill] sm:$0xff] }
 0x1d4   : > { %v4166_v7 = vadd.f32 %v1796_v18, %v1675_v51  ;;  %v4508_v18 = vld [vmem:[#allocation25_spill] sm:$0xff] }
 0x1d7   : > { %v1508_v56 = vpop.f32.mrf.mxu2 }
 0x1d8   : > { %v1542_v13 = vadd.f32 %v1508_v56, %v1189_v8  ;;  %v1642_v45 = vpop.f32.mrf.mxu3 }
 0x1d9   : > { %v1861_v12 = vpop.f32.mrf.mxu1 }
 0x1da   : > { %v1676_v34 = vadd.f32 %v1642_v45, %v1542_v13  ;;  %v2291_v11 = vpop.f32.mrf.mxu0  ;;  %v1941_v44 = vadd.f32 %v1861_v12, %v4508_v18  ;;  %v4510_v12 = vld [vmem:[#allocation30_spill] sm:$0xff] }
 0x1dc   : > { %2837 = vmatmul.msk.bf16.gmra.mxu1 %vm407_vm1, %v3776_v60  ;;  %2858 = vmatmul.msk.bf16.gmra.mxu2 %vm407_vm1, %v3001_v26  ;;  %v4172_v25 = vadd.f32 %v1798_v17, %v1676_v34 }
 0x1dd   : > { %2875 = vmatmul.msk.bf16.gmra.mxu3 %vm407_vm1, %v3780_v2  ;;  %2893 = vmatmul.msk.bf16.gmra.mxu0 %vm407_vm1, %v3819_v27 }
 0x1df   : > { %v1995_v19 = vpop.f32.mrf.mxu2 }
 0x1e0   : > { %v2075_v36 = vadd.f32 %v1995_v19, %v1941_v44  ;;  %v2151_v15 = vpop.f32.mrf.mxu3 }
 0x1e1   : > { %v1863_v38 = vpop.f32.mrf.mxu1 }
 0x1e2   : > { %v2231_v60 = vadd.f32 %v2151_v15, %v2075_v36  ;;  %v2293_v16 = vpop.f32.mrf.mxu0  ;;  %v1942_v39 = vadd.f32 %v1863_v38, %v4509_v23 }
 0x1e4   : > { %v2371_v43 = vadd.f32 %v2291_v11, %v2231_v60  ;;  %v4511_v11 = vld [vmem:[#allocation27_spill] sm:$0xff]  ;;  %v4512_v60 = vld [vmem:[#allocation28_spill] sm:$0xff] }
 0x1e6   : > { %2404 = vst.msk [vmem:[#allocation2] sm:$0xff] %vm207_vm8, %v2371_v43 }
 0x1e7   : > { %v1997_v46 = vpop.f32.mrf.mxu2 }
 0x1e8   : > { %v2076_v2 = vadd.f32 %v1997_v46, %v1942_v39  ;;  %v2153_v51 = vpop.f32.mrf.mxu3 }
 0x1e9   : > { %v1866_v8 = vpop.f32.mrf.mxu1 }
 0x1ea   : > { %v2232_v17 = vadd.f32 %v2153_v51, %v2076_v2  ;;  %v2296_v56 = vpop.f32.mrf.mxu0  ;;  %v1943_v26 = vadd.f32 %v1866_v8, %v4511_v11 }
 0x1ec   : > { %v2372_v13 = vadd.f32 %v2293_v16, %v2232_v17  ;;  %2838 = vmatmul.msk.bf16.gmra.mxu1 %vm407_vm1, %v3819_v27  ;;  %2859 = vmatmul.msk.bf16.gmra.mxu2 %vm407_vm1, %v3834_v50  ;;  %v4513_v17 = vld [vmem:[#allocation32_spill] sm:$0xff] }
 0x1ed   : > { %v2439_v45 = vld [vmem:[#allocation2] sm:$0xff]  ;;  %2876 = vmatmul.msk.bf16.gmra.mxu3 %vm407_vm1, %v3822_v52  ;;  %2894 = vmatmul.msk.bf16.gmra.mxu0 %vm407_vm1, %v4510_v12 }
 0x1ee   : > { %v2471_v34 = vmax.f32 %v2439_v45, 0.0  ;;  %2405 = vst.msk [vmem:[#allocation2 + $0x8] sm:$0xff] %vm207_vm8, %v2372_v13  ;;  %v4514_v45 = vld [vmem:[#allocation29_spill] sm:$0xff] }
 0x1ef   : > { %v2000_v18 = vpop.f32.mrf.mxu2 }
 0x1f0   : > { %2503 = vst.msk [vmem:[%s4194_s30] sm:$0xff] %vm207_vm8, %v2471_v34  ;;  %v2077_v27 = vadd.f32 %v2000_v18, %v1943_v26  ;;  %v2156_v50 = vpop.f32.mrf.mxu3 }
 0x1f1   : > { %v1868_v44 = vpop.f32.mrf.mxu1 }
 0x1f2   : > { %v2233_v19 = vadd.f32 %v2156_v50, %v2077_v27  ;;  %v2298_v52 = vpop.f32.mrf.mxu0  ;;  %v1944_v16 = vadd.f32 %v1868_v44, %v4512_v60 }
 0x1f4   : > { %v2373_v36 = vadd.f32 %v2296_v56, %v2233_v19 }
 0x1f5   : > { %v2440_v15 = vld [vmem:[#allocation2 + $0x8] sm:$0xff] }
 0x1f6   : > { %v2472_v38 = vmax.f32 %v2440_v15, 0.0  ;;  %2406 = vst.msk [vmem:[#allocation2 + $0x10] sm:$0xff] %vm207_vm8, %v2373_v36 }
 0x1f7   : > { %v2002_v43 = vpop.f32.mrf.mxu2 }
 0x1f8   : > { %2504 = vst.msk [vmem:[%s4194_s30 + $0x8] sm:$0xff] %vm207_vm8, %v2472_v38  ;;  %v2078_v23 = vadd.f32 %v2002_v43, %v1944_v16  ;;  %v2158_v39 = vpop.f32.mrf.mxu3 }
 0x1f9   : > { %v1871_v46 = vpop.f32.mrf.mxu1 }
 0x1fa   : > { %v2234_v2 = vadd.f32 %v2158_v39, %v2078_v23  ;;  %v2301_v51 = vpop.f32.mrf.mxu0  ;;  %v1945_v34 = vadd.f32 %v1871_v46, %v4514_v45  ;;  %v4516_v46 = vld [vmem:[#allocation35_spill] sm:$0xff] }
 0x1fc   : > { %v2374_v8 = vadd.f32 %v2298_v52, %v2234_v2  ;;  %2839 = vmatmul.msk.bf16.gmra.mxu1 %vm407_vm1, %v4510_v12  ;;  %2860 = vmatmul.msk.bf16.gmra.mxu2 %vm407_vm1, %v4513_v17  ;;  %v4515_v52 = vld [vmem:[#allocation31_spill] sm:$0xff] }
 0x1fd   : > { %v2441_v56 = vld [vmem:[#allocation2 + $0x10] sm:$0xff]  ;;  %2877 = vmatmul.msk.bf16.gmra.mxu3 %vm407_vm1, %v3868_v33  ;;  %2895 = vmatmul.msk.bf16.gmra.mxu0 %vm407_vm1, %v3911_v10 }
 0x1fe   : > { %v2473_v13 = vmax.f32 %v2441_v56, 0.0  ;;  %2407 = vst.msk [vmem:[#allocation2 + $0x18] sm:$0xff] %vm207_vm8, %v2374_v8  ;;  %v4517_v8 = vld [vmem:[#allocation33_spill] sm:$0xff] }
 0x1ff   : > { %v2005_v11 = vpop.f32.mrf.mxu2 }
 0x200   : > { %2505 = vst.msk [vmem:[%s4194_s30 + $0x10] sm:$0xff] %vm207_vm8, %v2473_v13  ;;  %v2079_v12 = vadd.f32 %v2005_v11, %v1945_v34  ;;  %v2161_v26 = vpop.f32.mrf.mxu3 }
 0x201   : > { %v1873_v18 = vpop.f32.mrf.mxu1 }
 0x202   : > { %v2235_v27 = vadd.f32 %v2161_v26, %v2079_v12  ;;  %v2303_v50 = vpop.f32.mrf.mxu0  ;;  %v1946_v36 = vadd.f32 %v1873_v18, %v4515_v52  ;;  %v4518_v18 = vld [vmem:[#allocation34_spill] sm:$0xff] }
 0x204   : > { %v2375_v44 = vadd.f32 %v2301_v51, %v2235_v27 }
 0x205   : > { %v2442_v19 = vld [vmem:[#allocation2 + $0x18] sm:$0xff] }
 0x206   : > { %v2474_v33 = vmax.f32 %v2442_v19, 0.0  ;;  %2408 = vst.msk [vmem:[#allocation2 + $0x20] sm:$0xff] %vm207_vm8, %v2375_v44 }
 0x207   : > { %v2007_v15 = vpop.f32.mrf.mxu2 }
 0x208   : > { %2506 = vst.msk [vmem:[%s4194_s30 + $0x18] sm:$0xff] %vm207_vm8, %v2474_v33  ;;  %v2080_v38 = vadd.f32 %v2007_v15, %v1946_v36  ;;  %v2163_v60 = vpop.f32.mrf.mxu3 }
 0x209   : > { %v1876_v16 = vpop.f32.mrf.mxu1 }
 0x20a   : > { %v2236_v43 = vadd.f32 %v2163_v60, %v2080_v38  ;;  %v2306_v23 = vpop.f32.mrf.mxu0  ;;  %v1947_v17 = vadd.f32 %v1876_v16, %v4517_v8 }
 0x20c   : > { %v2376_v39 = vadd.f32 %v2303_v50, %v2236_v43  ;;  %2840 = vmatmul.msk.bf16.gmra.mxu1 %vm407_vm1, %v3911_v10  ;;  %2861 = vmatmul.msk.bf16.gmra.mxu2 %vm407_vm1, %v4516_v46 }
 0x20d   : > { %v2443_v2 = vld [vmem:[#allocation2 + $0x20] sm:$0xff]  ;;  %2878 = vmatmul.msk.bf16.gmra.mxu3 %vm407_vm1, %v3915_v48  ;;  %2896 = vmatmul.msk.bf16.gmra.mxu0 %vm407_vm1, %v3957_v32 }
 0x20e   : > { %v2475_v51 = vmax.f32 %v2443_v2, 0.0  ;;  %2409 = vst.msk [vmem:[#allocation2 + $0x28] sm:$0xff] %vm207_vm8, %v2376_v39 }
 0x20f   : > { %v2010_v56 = vpop.f32.mrf.mxu2 }
 0x210   : > { %2507 = vst.msk [vmem:[%s4194_s30 + $0x20] sm:$0xff] %vm207_vm8, %v2475_v51  ;;  %v2081_v10 = vadd.f32 %v2010_v56, %v1947_v17  ;;  %v2166_v13 = vpop.f32.mrf.mxu3 }
 0x211   : > { %v1878_v45 = vpop.f32.mrf.mxu1 }
 0x212   : > { %v2237_v34 = vadd.f32 %v2166_v13, %v2081_v10  ;;  %v2308_v11 = vpop.f32.mrf.mxu0  ;;  %v1948_v27 = vadd.f32 %v1878_v45, %v4518_v18  ;;  %v1836_v10 = vrot.slane %v3982_v5, 5 }
 0x214   : > { %v2377_v12 = vadd.f32 %v2306_v23, %v2237_v34 }
 0x215   : > { %v2444_v26 = vld [vmem:[#allocation2 + $0x28] sm:$0xff] }
 0x216   : > { %v2476_v48 = vmax.f32 %v2444_v26, 0.0  ;;  %2410 = vst.msk [vmem:[#allocation2 + $0x30] sm:$0xff] %vm207_vm8, %v2377_v12  ;;  %v1838_v26 = vrot.slane %v1836_v10, 4 }
 0x217   : > { %v2012_v50 = vpop.f32.mrf.mxu2 }
 0x218   : > { %2508 = vst.msk [vmem:[%s4194_s30 + $0x28] sm:$0xff] %vm207_vm8, %v2476_v48  ;;  %v2082_v44 = vadd.f32 %v2012_v50, %v1948_v27  ;;  %v2168_v19 = vpop.f32.mrf.mxu3  ;;  %v1839_v48 = vrot.slane %v4000_v59, 5  ;;  %v4264_v27 = vld [vmem:[%s3180_s15 + $0xcc] sm:$0xf] }
 0x219   : > { %v1881_v33 = vpop.f32.mrf.mxu1 }
 0x21a   : > { %v2238_v52 = vadd.f32 %v2168_v19, %v2082_v44  ;;  %v2311_v36 = vpop.f32.mrf.mxu0  ;;  %v1949_v16 = vadd.f32 %v1881_v33, %v3951_v53  ;;  %v1840_v19 = vsel %vm3289_vm7, %v1838_v26, %v1839_v48 }
 0x21c   : > { %v2378_v15 = vadd.f32 %v2308_v11, %v2238_v52  ;;  %2841 = vmatmul.msk.bf16.gmra.mxu1 %vm407_vm1, %v3957_v32  ;;  %2862 = vmatmul.msk.bf16.gmra.mxu2 %vm407_vm1, %v3972_v0  ;;  %v2108_v52 = vshrl.u32 %v4264_v27, 16 }
 0x21d   : > { %v2445_v38 = vld [vmem:[#allocation2 + $0x30] sm:$0xff]  ;;  %2879 = vmatmul.msk.bf16.gmra.mxu3 %vm407_vm1, %v3960_v63  ;;  %2897 = vmatmul.msk.bf16.gmra.mxu0 %vm407_vm1, %v4003_v28 }
 0x21e   : > { %v2477_v60 = vmax.f32 %v2445_v38, 0.0  ;;  %2411 = vst.msk [vmem:[#allocation2 + $0x38] sm:$0xff] %vm207_vm8, %v2378_v15 }
 0x21f   : > { %v2015_v43 = vpop.f32.mrf.mxu2 }
 0x220   : > { %2509 = vst.msk [vmem:[%s4194_s30 + $0x30] sm:$0xff] %vm207_vm8, %v2477_v60  ;;  %v2083_v32 = vadd.f32 %v2015_v43, %v1949_v16  ;;  %v2171_v23 = vpop.f32.mrf.mxu3 }
 0x221   : > { %v1883_v39 = vpop.f32.mrf.mxu1 }
 0x222   : > { %v2239_v0 = vadd.f32 %v2171_v23, %v2083_v32  ;;  %v2313_v46 = vpop.f32.mrf.mxu0  ;;  %v1950_v8 = vadd.f32 %v1883_v39, %v3969_v35  ;;  %v4519_v35 = vld [vmem:[#allocation36_spill] sm:$0xff]  ;;  %v1844_v32 = vunpack.c.l.b16 %v1840_v19  ;;  %v2110_v39 = vrot.slane %v2108_v52, 4 }
 0x223   : > { %v2827_v12 = vrot.slane %v4519_v35, 9 }
 0x224   : > { %v2379_v2 = vadd.f32 %v2311_v36, %v2239_v0 }
 0x225   : > { %v2446_v51 = vld [vmem:[#allocation2 + $0x38] sm:$0xff] }
 0x226   : > { %v2478_v63 = vmax.f32 %v2446_v51, 0.0  ;;  %2412 = vst.msk [vmem:[#allocation2 + $0x40] sm:$0xff] %vm207_vm8, %v2379_v2 }
 0x227   : > { %v2017_v17 = vpop.f32.mrf.mxu2 }
 0x228   : > { %2510 = vst.msk [vmem:[%s4194_s30 + $0x38] sm:$0xff] %vm207_vm8, %v2478_v63  ;;  %v2084_v56 = vadd.f32 %v2017_v17, %v1950_v8  ;;  %v2173_v53 = vpop.f32.mrf.mxu3  ;;  %v293_v8 = vld [vmem:[%s3180_s15 + $0xd4] sm:$0x1] }
 0x229   : > { %v1886_v13 = vpop.f32.mrf.mxu1 }
 0x22a   : > { %v2240_v45 = vadd.f32 %v2173_v53, %v2084_v56  ;;  %v2316_v34 = vpop.f32.mrf.mxu0 }
 0x22c   : > { %v2380_v11 = vadd.f32 %v2313_v46, %v2240_v45  ;;  %2842 = vmatmul.msk.bf16.gmra.mxu1 %vm407_vm1, %v4003_v28  ;;  %2863 = vmatmul.msk.bf16.gmra.mxu2 %vm407_vm1, %v4016_v40  ;;  %v1951_v28 = vadd.f32 %v1886_v13, %v3997_v49  ;;  %v4267_v40 = vld [vmem:[%s3180_s15 + $0xd0] sm:$0xf]  ;;  %v2111_v49 = vshll.u32 %v4264_v27, 16 }
 0x22d   : > { %v2447_v18 = vld [vmem:[#allocation2 + $0x40] sm:$0xff]  ;;  %2880 = vmatmul.msk.bf16.gmra.mxu3 %vm407_vm1, %v4005_v54  ;;  %2898 = vmatmul.msk.bf16.gmra.mxu0 %vm407_vm1, %v4036_v6  ;;  %v1837_v54 = vsel %vm3289_vm7, %v2827_v12, %v1836_v10  ;;  %v2117_v36 = vshll.u32 %v4267_v40, 16  ;;  %v2121_v15 = vshrl.u32 %v4267_v40, 16  ;;  %v2266_v26 = vrot.slane %v4267_v40, 5 }
 0x22e   : > { %v2479_v5 = vmax.f32 %v2447_v18, 0.0  ;;  %2413 = vst.msk [vmem:[#allocation2 + $0x48] sm:$0xff] %vm207_vm8, %v2380_v11  ;;  %v1843_v43 = vunpack.c.l.b16 %v1837_v54  ;;  %v2113_v0 = vrot.slane %v2111_v49, 5  ;;  %v2127_v11 = vshll.u32 %v293_v8, 16 }
 0x22f   : > { %v2020_v50 = vpop.f32.mrf.mxu2  ;;  %v2119_v46 = vrot.slane %v2117_v36, 5  ;;  %v2123_v2 = vrot.slane %v2121_v15, 4 }
 0x230   : > { %2511 = vst.msk [vmem:[%s4194_s30 + $0x40] sm:$0xff] %vm207_vm8, %v2479_v5  ;;  %v2085_v59 = vadd.f32 %v2020_v50, %v1951_v28  ;;  %v2176_v44 = vpop.f32.mrf.mxu3  ;;  %v1845_v13 = vpack.c.b16 %v1844_v32, %v1843_v43  ;;  %v2114_v45 = vor.u32 %v2113_v0, %v2110_v39  ;;  %v2129_v28 = vrot.slane %v2127_v11, 5 }
 0x231   : > { %v1888_v33 = vpop.f32.mrf.mxu1  ;;  %v2883_v50 = vrot.slane %v4264_v27, 9 }
 0x232   : > { %v2241_v38 = vadd.f32 %v2176_v44, %v2085_v59  ;;  %v2318_v60 = vpop.f32.mrf.mxu0  ;;  %v1952_v63 = vadd.f32 %v1888_v33, %v4013_v42  ;;  %v2115_v18 = vrot.slane %v2114_v45, 4  ;;  %v2269_v44 = vrot.slane %v293_v8, 5 }
 0x234   : > { %v2381_v16 = vadd.f32 %v2316_v34, %v2241_v38  ;;  %v2124_v34 = vor.u32 %v2123_v2, %v2119_v46  ;;  %v2120_v33 = vsel %vm3284_vm6, %v2115_v18, %v2119_v46  ;;  %v2923_v2 = vld [vmem:[%s3180_s15 + $0xcc] sm:$0xff]  ;;  %s3016_s15 = sshra.s32 %s2552_s8, 4  ;;  %s3017_s15 = int_to_ptr.hbm [resolvable:$true] %s3016_s15 }
 0x235   : > { %v2448_v23 = vld [vmem:[#allocation2 + $0x48] sm:$0xff]  ;;  %s3018_s16 = scalar_lea.hbm %s3017_s15, 256  ;;  %p3023_p1 = scmp.lt.s32.totalorder %s3017_s15, %s4432_s2 }
 0x236   : > { %v2480_v51 = vmax.f32 %v2448_v23, 0.0  ;;  %2414 = vst.msk [vmem:[#allocation2 + $0x50] sm:$0xff] %vm207_vm8, %v2381_v16  ;;  %v2125_v5 = vrot.slane %v2124_v34, 4  ;;  %p3019_p12 = scmp.ne.s32.totalorder %s3017_s15, %s3018_s16  ;;  %p3024_p2 = scmp.lt.s32.totalorder %s3022_s23, %s3018_s16 }
 0x237   : > { %v2022_v17 = vpop.f32.mrf.mxu2 }
 0x238   : > { %2512 = vst.msk [vmem:[%s4194_s30 + $0x48] sm:$0xff] %vm207_vm8, %v2480_v51  ;;  %v2086_v56 = vadd.f32 %v2022_v17, %v1952_v63  ;;  %v2178_v53 = vpop.f32.mrf.mxu3  ;;  %v2130_v27 = vsel %vm3284_vm6, %v2125_v5, %v2129_v28  ;;  %p3020_p13 = pnand %p3019_p12, %p3140_p4  ;;  %p3025_p3 = por %p3024_p2, %p3023_p1 }
 0x239   : > { %v1891_v10 = vpop.f32.mrf.mxu1  ;;  %v2134_v16 = vunpack.c.l.b16 %v2130_v27 }
 0x23a   : > { %v2242_v35 = vadd.f32 %v2178_v53, %v2086_v56  ;;  %v2321_v12 = vpop.f32.mrf.mxu0  ;;  %v1953_v59 = vadd.f32 %v1891_v10, %v4033_v47  ;;  %v2267_v47 = vsel %vm3289_vm7, %v2883_v50, %v2266_v26  ;;  %p3021_p0 = pneg %p3020_p13 }
 0x23b   : > { %v2273_v43 = vunpack.c.l.b16 %v2267_v47 }
 0x23c   : > { %v2382_v48 = vadd.f32 %v2318_v60, %v2242_v35  ;;  %2843 = vmatmul.msk.bf16.gmra.mxu1 %vm407_vm1, %v4036_v6  ;;  %2864 = vmatmul.msk.bf16.gmra.mxu2 %vm407_vm1, %v4039_v1  ;;  %v2268_v6 = vrot.slane %v2266_v26, 4  ;;  %v2133_v60 = vunpack.c.l.b16 %v2120_v33  ;;  %p3026_p5 = pnand %p3025_p3, %p3021_p0 }
 0x23d   : > { %v2449_v42 = vld [vmem:[#allocation2 + $0x50] sm:$0xff]  ;;  %2881 = vmatmul.msk.bf16.gmra.mxu3 %vm407_vm1, %v4041_v58  ;;  %2899 = vmatmul.msk.bf16.gmra.mxu0 %vm407_vm1, %v1845_v13 }
 0x23e   : > { %v2481_v40 = vmax.f32 %v2449_v42, 0.0  ;;  %2415 = vst.msk [vmem:[#allocation2 + $0x58] sm:$0xff] %vm207_vm8, %v2382_v48  ;;  %v2270_v36 = vsel %vm3289_vm7, %v2268_v6, %v2269_v44  ;;  %v2135_v51 = vpack.c.b16 %v2134_v16, %v2133_v60 }
 0x23f   : > { %v2025_v54 = vpop.f32.mrf.mxu2  ;;  %v2274_v32 = vunpack.c.l.b16 %v2270_v36 }
 0x240   : > { %2513 = vst.msk [vmem:[%s4194_s30 + $0x50] sm:$0xff] %vm207_vm8, %v2481_v40  ;;  %v2087_v1 = vadd.f32 %v2025_v54, %v1953_v59  ;;  %v2181_v19 = vpop.f32.mrf.mxu3 }
 0x241   : > { %v1893_v58 = vpop.f32.mrf.mxu1  ;;  %v2275_v63 = vpack.c.b16 %v2274_v32, %v2273_v43 }
 0x242   : > { %v2243_v52 = vadd.f32 %v2181_v19, %v2087_v1  ;;  %v2323_v49 = vpop.f32.mrf.mxu0  ;;  %v1954_v39 = vadd.f32 %v1893_v58, %v4047_v62 }
 0x244   : > { %v2383_v15 = vadd.f32 %v2321_v12, %v2243_v52 }
 0x245   : > { %v2450_v38 = vld [vmem:[#allocation2 + $0x58] sm:$0xff] }
 0x246   : > { %v2482_v23 = vmax.f32 %v2450_v38, 0.0  ;;  %2416 = vst.msk [vmem:[#allocation2 + $0x60] sm:$0xff] %vm207_vm8, %v2383_v15 }
 0x247   : > { %v2027_v4 = vpop.f32.mrf.mxu2 }
 0x248   : > { %2514 = vst.msk [vmem:[%s4194_s30 + $0x58] sm:$0xff] %vm207_vm8, %v2482_v23  ;;  %v2088_v0 = vadd.f32 %v2027_v4, %v1954_v39  ;;  %v2183_v46 = vpop.f32.mrf.mxu3 }
 0x249   : > { %v1896_v9 = vpop.f32.mrf.mxu1 }
 0x24a   : > { %v2244_v8 = vadd.f32 %v2183_v46, %v2088_v0  ;;  %v2326_v17 = vpop.f32.mrf.mxu0  ;;  %v1955_v10 = vadd.f32 %v1896_v9, %v4054_v30 }
 0x24c   : > { %v2384_v56 = vadd.f32 %v2323_v49, %v2244_v8  ;;  %2844 = vmatmul.msk.bf16.gmra.mxu1 %vm407_vm1, %v1845_v13  ;;  %2865 = vmatmul.msk.bf16.gmra.mxu2 %vm407_vm1, %v2923_v2 }
 0x24d   : > { %v2451_v53 = vld [vmem:[#allocation2 + $0x60] sm:$0xff]  ;;  %2882 = vmatmul.msk.bf16.gmra.mxu3 %vm407_vm1, %v2135_v51  ;;  %2900 = vmatmul.msk.bf16.gmra.mxu0 %vm407_vm1, %v2275_v63 }
 0x24e   : > { %v2483_v62 = vmax.f32 %v2451_v53, 0.0  ;;  %2417 = vst.msk [vmem:[#allocation2 + $0x68] sm:$0xff] %vm207_vm8, %v2384_v56 }
 0x24f   : > { %v2030_v45 = vpop.f32.mrf.mxu2 }
 0x250   : > { %2515 = vst.msk [vmem:[%s4194_s30 + $0x60] sm:$0xff] %vm207_vm8, %v2483_v62  ;;  %v2089_v34 = vadd.f32 %v2030_v45, %v1955_v10  ;;  %v2186_v11 = vpop.f32.mrf.mxu3 }
 0x251   : > { %v1898_v35 = vpop.f32.mrf.mxu1 }
 0x252   : > { %v2245_v13 = vadd.f32 %v2186_v11, %v2089_v34  ;;  %v2328_v12 = vpop.f32.mrf.mxu0  ;;  %v1956_v18 = vadd.f32 %v1898_v35, %v4061_v57 }
 0x254   : > { %v2385_v26 = vadd.f32 %v2326_v17, %v2245_v13 }
 0x255   : > { %v2452_v48 = vld [vmem:[#allocation2 + $0x68] sm:$0xff] }
 0x256   : > { %v2484_v42 = vmax.f32 %v2452_v48, 0.0  ;;  %2418 = vst.msk [vmem:[#allocation2 + $0x70] sm:$0xff] %vm207_vm8, %v2385_v26 }
 0x257   : > { %v2032_v5 = vpop.f32.mrf.mxu2 }
 0x258   : > { %2516 = vst.msk [vmem:[%s4194_s30 + $0x68] sm:$0xff] %vm207_vm8, %v2484_v42  ;;  %v2090_v30 = vadd.f32 %v2032_v5, %v1956_v18  ;;  %v2188_v28 = vpop.f32.mrf.mxu3 }
 0x259   : > { %v1901_v50 = vpop.f32.mrf.mxu1 }
 0x25a   : > { %v2246_v40 = vadd.f32 %v2188_v28, %v2090_v30  ;;  %v2331_v59 = vpop.f32.mrf.mxu0  ;;  %v1957_v1 = vadd.f32 %v1901_v50, %v4068_v22 }
 0x25c   : > { %v2386_v6 = vadd.f32 %v2328_v12, %v2246_v40 }
 0x25d   : > { %v2453_v44 = vld [vmem:[#allocation2 + $0x70] sm:$0xff] }
 0x25e   : > { %v2485_v54 = vmax.f32 %v2453_v44, 0.0  ;;  %2419 = vst.msk [vmem:[#allocation2 + $0x78] sm:$0xff] %vm207_vm8, %v2386_v6 }
 0x25f   : > { %v2035_v19 = vpop.f32.mrf.mxu2 }
 0x260   : > { %2517 = vst.msk [vmem:[%s4194_s30 + $0x70] sm:$0xff] %vm207_vm8, %v2485_v54  ;;  %v2091_v57 = vadd.f32 %v2035_v19, %v1957_v1  ;;  %v2191_v58 = vpop.f32.mrf.mxu3 }
 0x261   : > { %v1903_v33 = vpop.f32.mrf.mxu1 }
 0x262   : > { %v2247_v52 = vadd.f32 %v2191_v58, %v2091_v57  ;;  %v2333_v49 = vpop.f32.mrf.mxu0  ;;  %v1958_v15 = vadd.f32 %v1903_v33, %v4075_v29 }
 0x264   : > { %v2387_v27 = vadd.f32 %v2331_v59, %v2247_v52 }
 0x265   : > { %v2454_v47 = vld [vmem:[#allocation2 + $0x78] sm:$0xff] }
 0x266   : > { %v2486_v36 = vmax.f32 %v2454_v47, 0.0  ;;  %2420 = vst.msk [vmem:[#allocation2 + $0x80] sm:$0xff] %vm207_vm8, %v2387_v27 }
 0x267   : > { %v2037_v38 = vpop.f32.mrf.mxu2 }
 0x268   : > { %2518 = vst.msk [vmem:[%s4194_s30 + $0x78] sm:$0xff] %vm207_vm8, %v2486_v36  ;;  %v2092_v22 = vadd.f32 %v2037_v38, %v1958_v15  ;;  %v2193_v60 = vpop.f32.mrf.mxu3 }
 0x269   : > { %v1906_v16 = vpop.f32.mrf.mxu1 }
 0x26a   : > { %v2248_v43 = vadd.f32 %v2193_v60, %v2092_v22  ;;  %v2336_v32 = vpop.f32.mrf.mxu0  ;;  %v1959_v0 = vadd.f32 %v1906_v16, %v4082_v37 }
 0x26c   : > { %v2388_v23 = vadd.f32 %v2333_v49, %v2248_v43 }
 0x26d   : > { %v2455_v39 = vld [vmem:[#allocation2 + $0x80] sm:$0xff] }
 0x26e   : > { %v2487_v4 = vmax.f32 %v2455_v39, 0.0  ;;  %2421 = vst.msk [vmem:[#allocation2 + $0x88] sm:$0xff] %vm207_vm8, %v2388_v23 }
 0x26f   : > { %v2040_v46 = vpop.f32.mrf.mxu2 }
 0x270   : > { %2519 = vst.msk [vmem:[%s4194_s30 + $0x80] sm:$0xff] %vm207_vm8, %v2487_v4  ;;  %v2093_v29 = vadd.f32 %v2040_v46, %v1959_v0  ;;  %v2196_v2 = vpop.f32.mrf.mxu3 }
 0x271   : > { %v1908_v9 = vpop.f32.mrf.mxu1 }
 0x272   : > { %v2249_v51 = vadd.f32 %v2196_v2, %v2093_v29  ;;  %v2338_v63 = vpop.f32.mrf.mxu0  ;;  %v1960_v53 = vadd.f32 %v1908_v9, %v4089_v3 }
 0x274   : > { %v2389_v8 = vadd.f32 %v2336_v32, %v2249_v51 }
 0x275   : > { %v2456_v17 = vld [vmem:[#allocation2 + $0x88] sm:$0xff] }
 0x276   : > { %v2488_v56 = vmax.f32 %v2456_v17, 0.0  ;;  %2422 = vst.msk [vmem:[#allocation2 + $0x90] sm:$0xff] %vm207_vm8, %v2389_v8 }
 0x277   : > { %v2042_v62 = vpop.f32.mrf.mxu2 }
 0x278   : > { %2520 = vst.msk [vmem:[%s4194_s30 + $0x88] sm:$0xff] %vm207_vm8, %v2488_v56  ;;  %v2094_v37 = vadd.f32 %v2042_v62, %v1960_v53  ;;  %v2198_v10 = vpop.f32.mrf.mxu3 }
 0x279   : > { %v1911_v45 = vpop.f32.mrf.mxu1 }
 0x27a   : > { %v2250_v34 = vadd.f32 %v2198_v10, %v2094_v37  ;;  %v2341_v11 = vpop.f32.mrf.mxu0  ;;  %v1961_v26 = vadd.f32 %v1911_v45, %v4096_v24 }
 0x27c   : > { %v2390_v35 = vadd.f32 %v2338_v63, %v2250_v34 }
 0x27d   : > { %v2457_v13 = vld [vmem:[#allocation2 + $0x90] sm:$0xff] }
 0x27e   : > { %v2489_v12 = vmax.f32 %v2457_v13, 0.0  ;;  %2423 = vst.msk [vmem:[#allocation2 + $0x98] sm:$0xff] %vm207_vm8, %v2390_v35 }
 0x27f   : > { %v2045_v48 = vpop.f32.mrf.mxu2 }
 0x280   : > { %2521 = vst.msk [vmem:[%s4194_s30 + $0x90] sm:$0xff] %vm207_vm8, %v2489_v12  ;;  %v2095_v3 = vadd.f32 %v2045_v48, %v1961_v26  ;;  %v2201_v42 = vpop.f32.mrf.mxu3  ;;  %v4520_v48 = vld [vmem:[#allocation16_spill] sm:$0xff] }
 0x281   : > { %v1913_v18 = vpop.f32.mrf.mxu1 }
 0x282   : > { %v2251_v5 = vadd.f32 %v2201_v42, %v2095_v3  ;;  %v2343_v30 = vpop.f32.mrf.mxu0  ;;  %v1962_v59 = vadd.f32 %v1913_v18, %v4103_v55 }
 0x284   : > { %v2391_v28 = vadd.f32 %v2341_v11, %v2251_v5 }
 0x285   : > { %v2458_v50 = vld [vmem:[#allocation2 + $0x98] sm:$0xff] }
 0x286   : > { %v2490_v40 = vmax.f32 %v2458_v50, 0.0  ;;  %2424 = vst.msk [vmem:[#allocation2 + $0xa0] sm:$0xff] %vm207_vm8, %v2391_v28 }
 0x287   : > { %v2047_v6 = vpop.f32.mrf.mxu2 }
 0x288   : > { %2522 = vst.msk [vmem:[%s4194_s30 + $0x98] sm:$0xff] %vm207_vm8, %v2490_v40  ;;  %v2096_v24 = vadd.f32 %v2047_v6, %v1962_v59  ;;  %v2203_v44 = vpop.f32.mrf.mxu3  ;;  %v4521_v6 = vld [vmem:[#allocation20_spill] sm:$0xff] }
 0x289   : > { %v1916_v54 = vpop.f32.mrf.mxu1 }
 0x28a   : > { %v2252_v1 = vadd.f32 %v2203_v44, %v2096_v24  ;;  %v2346_v19 = vpop.f32.mrf.mxu0  ;;  %v1963_v52 = vadd.f32 %v1916_v54, %v4110_v14 }
 0x28c   : > { %v2392_v57 = vadd.f32 %v2343_v30, %v2252_v1 }
 0x28d   : > { %v2459_v58 = vld [vmem:[#allocation2 + $0xa0] sm:$0xff] }
 0x28e   : > { %v2491_v33 = vmax.f32 %v2459_v58, 0.0  ;;  %2425 = vst.msk [vmem:[#allocation2 + $0xa8] sm:$0xff] %vm207_vm8, %v2392_v57 }
 0x28f   : > { %v2050_v49 = vpop.f32.mrf.mxu2 }
 0x290   : > { %2523 = vst.msk [vmem:[%s4194_s30 + $0xa0] sm:$0xff] %vm207_vm8, %v2491_v33  ;;  %v2097_v55 = vadd.f32 %v2050_v49, %v1963_v52  ;;  %v2206_v27 = vpop.f32.mrf.mxu3 }
 0x291   : > { %v1918_v47 = vpop.f32.mrf.mxu1 }
 0x292   : > { %v2253_v36 = vadd.f32 %v2206_v27, %v2097_v55  ;;  %v2348_v15 = vpop.f32.mrf.mxu0  ;;  %v1964_v16 = vadd.f32 %v1918_v47, %v4117_v20 }
 0x294   : > { %v2393_v38 = vadd.f32 %v2346_v19, %v2253_v36 }
 0x295   : > { %v2460_v22 = vld [vmem:[#allocation2 + $0xa8] sm:$0xff] }
 0x296   : > { %v2492_v60 = vmax.f32 %v2460_v22, 0.0  ;;  %2426 = vst.msk [vmem:[#allocation2 + $0xb0] sm:$0xff] %vm207_vm8, %v2393_v38 }
 0x297   : > { %v2052_v43 = vpop.f32.mrf.mxu2 }
 0x298   : > { %2524 = vst.msk [vmem:[%s4194_s30 + $0xa8] sm:$0xff] %vm207_vm8, %v2492_v60  ;;  %v2098_v14 = vadd.f32 %v2052_v43, %v1964_v16  ;;  %v2208_v32 = vpop.f32.mrf.mxu3 }
 0x299   : > { %v1921_v23 = vpop.f32.mrf.mxu1 }
 0x29a   : > { %v2254_v39 = vadd.f32 %v2208_v32, %v2098_v14  ;;  %v2351_v4 = vpop.f32.mrf.mxu0  ;;  %v1965_v2 = vadd.f32 %v1921_v23, %v4124_v61 }
 0x29c   : > { %v2394_v0 = vadd.f32 %v2348_v15, %v2254_v39 }
 0x29d   : > { %v2461_v46 = vld [vmem:[#allocation2 + $0xb0] sm:$0xff] }
 0x29e   : > { %v2493_v29 = vmax.f32 %v2461_v46, 0.0  ;;  %2427 = vst.msk [vmem:[#allocation2 + $0xb8] sm:$0xff] %vm207_vm8, %v2394_v0 }
 0x29f   : > { %v2055_v9 = vpop.f32.mrf.mxu2 }
 0x2a0   : > { %2525 = vst.msk [vmem:[%s4194_s30 + $0xb0] sm:$0xff] %vm207_vm8, %v2493_v29  ;;  %v2099_v20 = vadd.f32 %v2055_v9, %v1965_v2  ;;  %v2211_v51 = vpop.f32.mrf.mxu3 }
 0x2a1   : > { %v1923_v63 = vpop.f32.mrf.mxu1 }
 0x2a2   : > { %v2255_v8 = vadd.f32 %v2211_v51, %v2099_v20  ;;  %v2353_v17 = vpop.f32.mrf.mxu0  ;;  %v1966_v37 = vadd.f32 %v1923_v63, %v4131_v31 }
 0x2a4   : > { %v2395_v56 = vadd.f32 %v2351_v4, %v2255_v8 }
 0x2a5   : > { %v2462_v53 = vld [vmem:[#allocation2 + $0xb8] sm:$0xff] }
 0x2a6   : > { %v2494_v62 = vmax.f32 %v2462_v53, 0.0  ;;  %2428 = vst.msk [vmem:[#allocation2 + $0xc0] sm:$0xff] %vm207_vm8, %v2395_v56 }
 0x2a7   : > { %v2057_v10 = vpop.f32.mrf.mxu2 }
 0x2a8   : > { %2526 = vst.msk [vmem:[%s4194_s30 + $0xb8] sm:$0xff] %vm207_vm8, %v2494_v62  ;;  %v2100_v61 = vadd.f32 %v2057_v10, %v1966_v37  ;;  %v2213_v45 = vpop.f32.mrf.mxu3 }
 0x2a9   : > { %v1926_v34 = vpop.f32.mrf.mxu1 }
 0x2aa   : > { %v2256_v11 = vadd.f32 %v2213_v45, %v2100_v61  ;;  %v2356_v35 = vpop.f32.mrf.mxu0  ;;  %v1967_v3 = vadd.f32 %v1926_v34, %v4520_v48 }
 0x2ac   : > { %v2396_v13 = vadd.f32 %v2353_v17, %v2256_v11 }
 0x2ad   : > { %v2463_v12 = vld [vmem:[#allocation2 + $0xc0] sm:$0xff] }
 0x2ae   : > { %v2495_v26 = vmax.f32 %v2463_v12, 0.0  ;;  %2429 = vst.msk [vmem:[#allocation2 + $0xc8] sm:$0xff] %vm207_vm8, %v2396_v13 }
 0x2af   : > { %v2060_v42 = vpop.f32.mrf.mxu2 }
 0x2b0   : > { %2527 = vst.msk [vmem:[%s4194_s30 + $0xc0] sm:$0xff] %vm207_vm8, %v2495_v26  ;;  %v2101_v31 = vadd.f32 %v2060_v42, %v1967_v3  ;;  %v2216_v18 = vpop.f32.mrf.mxu3 }
 0x2b1   : > { %v1928_v5 = vpop.f32.mrf.mxu1 }
 0x2b2   : > { %v2257_v30 = vadd.f32 %v2216_v18, %v2101_v31  ;;  %v2358_v28 = vpop.f32.mrf.mxu0  ;;  %v1968_v24 = vadd.f32 %v1928_v5, %v4521_v6 }
 0x2b4   : > { %v2397_v50 = vadd.f32 %v2356_v35, %v2257_v30 }
 0x2b5   : > { %v2464_v40 = vld [vmem:[#allocation2 + $0xc8] sm:$0xff] }
 0x2b6   : > { %v2496_v59 = vmax.f32 %v2464_v40, 0.0  ;;  %2430 = vst.msk [vmem:[#allocation2 + $0xd0] sm:$0xff] %vm207_vm8, %v2397_v50 }
 0x2b7   : > { %v2062_v44 = vpop.f32.mrf.mxu2 }
 0x2b8   : > { %2528 = vst.msk [vmem:[%s4194_s30 + $0xc8] sm:$0xff] %vm207_vm8, %v2496_v59  ;;  %v2102_v54 = vadd.f32 %v2062_v44, %v1968_v24  ;;  %v2218_v1 = vpop.f32.mrf.mxu3 }
 0x2b9   : > { %v1931_v19 = vpop.f32.mrf.mxu1 }
 0x2ba   : > { %v2258_v57 = vadd.f32 %v2218_v1, %v2102_v54  ;;  %v2361_v52 = vpop.f32.mrf.mxu0  ;;  %v1969_v55 = vadd.f32 %v1931_v19, %v4152_v21 }
 0x2bc   : > { %v2398_v58 = vadd.f32 %v2358_v28, %v2258_v57 }
 0x2bd   : > { %v2465_v33 = vld [vmem:[#allocation2 + $0xd0] sm:$0xff] }
 0x2be   : > { %v2497_v49 = vmax.f32 %v2465_v33, 0.0  ;;  %2431 = vst.msk [vmem:[#allocation2 + $0xd8] sm:$0xff] %vm207_vm8, %v2398_v58 }
 0x2bf   : > { %v2065_v27 = vpop.f32.mrf.mxu2 }
 0x2c0   : > { %2529 = vst.msk [vmem:[%s4194_s30 + $0xd0] sm:$0xff] %vm207_vm8, %v2497_v49  ;;  %v2103_v47 = vadd.f32 %v2065_v27, %v1969_v55  ;;  %v2221_v36 = vpop.f32.mrf.mxu3 }
 0x2c1   : > { %v1933_v15 = vpop.f32.mrf.mxu1 }
 0x2c2   : > { %v2259_v38 = vadd.f32 %v2221_v36, %v2103_v47  ;;  %v1970_v43 = vadd.f32 %v1933_v15, %v4159_v41  ;;  %v2363_v14 = vpop.f32.mrf.mxu0 }
 0x2c4   : > { %v2399_v22 = vadd.f32 %v2361_v52, %v2259_v38 }
 0x2c5   : > { %v2466_v60 = vld [vmem:[#allocation2 + $0xd8] sm:$0xff] }
 0x2c6   : > { %v2498_v16 = vmax.f32 %v2466_v60, 0.0  ;;  %2432 = vst.msk [vmem:[#allocation2 + $0xe0] sm:$0xff] %vm207_vm8, %v2399_v22 }
 0x2c7   : > { %v2067_v32 = vpop.f32.mrf.mxu2 }
 0x2c8   : > { %2530 = vst.msk [vmem:[%s4194_s30 + $0xd8] sm:$0xff] %vm207_vm8, %v2498_v16  ;;  %v2104_v21 = vadd.f32 %v2067_v32, %v1970_v43  ;;  %v2223_v23 = vpop.f32.mrf.mxu3 }
 0x2c9   : > { %v1936_v39 = vpop.f32.mrf.mxu1 }
 0x2ca   : > { %v2260_v4 = vadd.f32 %v2223_v23, %v2104_v21  ;;  %v1971_v2 = vadd.f32 %v1936_v39, %v4166_v7  ;;  %v2366_v51 = vpop.f32.mrf.mxu0 }
 0x2cc   : > { %v2400_v0 = vadd.f32 %v2363_v14, %v2260_v4 }
 0x2cd   : > { %v2467_v46 = vld [vmem:[#allocation2 + $0xe0] sm:$0xff] }
 0x2ce   : > { %v2499_v29 = vmax.f32 %v2467_v46, 0.0  ;;  %2433 = vst.msk [vmem:[#allocation2 + $0xe8] sm:$0xff] %vm207_vm8, %v2400_v0 }
 0x2cf   : > { %v2070_v9 = vpop.f32.mrf.mxu2 }
 0x2d0   : > { %2531 = vst.msk [vmem:[%s4194_s30 + $0xe0] sm:$0xff] %vm207_vm8, %v2499_v29  ;;  %v2105_v41 = vadd.f32 %v2070_v9, %v1971_v2  ;;  %v2226_v20 = vpop.f32.mrf.mxu3 }
 0x2d1   : > { %v1938_v8 = vpop.f32.mrf.mxu1 }
 0x2d2   : > { %v2261_v63 = vadd.f32 %v2226_v20, %v2105_v41  ;;  %v1972_v62 = vadd.f32 %v1938_v8, %v4172_v25  ;;  %v2368_v45 = vpop.f32.mrf.mxu0 }
 0x2d4   : > { %v2401_v17 = vadd.f32 %v2366_v51, %v2261_v63 }
 0x2d5   : > { %v2468_v56 = vld [vmem:[#allocation2 + $0xe8] sm:$0xff] }
 0x2d6   : > { %v2500_v53 = vmax.f32 %v2468_v56, 0.0  ;;  %2434 = vst.msk [vmem:[#allocation2 + $0xf0] sm:$0xff] %vm207_vm8, %v2401_v17 }
 0x2d7   : > { %v2072_v37 = vpop.f32.mrf.mxu2 }
 0x2d8   : > { %2532 = vst.msk [vmem:[%s4194_s30 + $0xe8] sm:$0xff] %vm207_vm8, %v2500_v53  ;;  %v2106_v7 = vadd.f32 %v2072_v37, %v1972_v62  ;;  %v2228_v10 = vpop.f32.mrf.mxu3 }
 0x2da   : > { %v2262_v61 = vadd.f32 %v2228_v10, %v2106_v7 }
 0x2dc   : > { %v2402_v34 = vadd.f32 %v2368_v45, %v2262_v61 }
 0x2dd   : > { %v2469_v11 = vld [vmem:[#allocation2 + $0xf0] sm:$0xff] }
 0x2de   : > { %v2501_v35 = vmax.f32 %v2469_v11, 0.0  ;;  %2435 = vst.msk [vmem:[#allocation2 + $0xf8] sm:$0xff] %vm207_vm8, %v2402_v34 }
 0x2e0   : > { %2533 = vst.msk [vmem:[%s4194_s30 + $0xf0] sm:$0xff] %vm207_vm8, %v2501_v35 }
 0x2e5   : > { %v2470_v25 = vld [vmem:[#allocation2 + $0xf8] sm:$0xff] }
 0x2e6   : > { %v2502_v13 = vmax.f32 %v2470_v25, 0.0 }
 0x2e8   : > { %2534 = vst.msk [vmem:[%s4194_s30 + $0xf8] sm:$0xff] %vm207_vm8, %v2502_v13 }
 0x2e9   : > { %3029 = shalt.err (!%p3026_p5)
}
 0x2ea   : > { %s3083_s26 = smov 128   ;;  %s3084_s27 = smov 8  }
 0x2eb   : > { %2929 = dma.vmem_to_hbm [thread:$0]  (%p3140_p4), %s2550_s7, 4096, %s2552_s8, %s2536_s12, %s3083_s26, %s3083_s26, %s3084_s27  }
 0x2ec PF: > { %p2935_p6 = scmp.ge.s32.totalorder %s3080_s14, 2  ;;  %s2566_s28 = sand.u32 1, %s3060_s9  }
 0x2ed   : > { %s2567_s29 = scalar_lea.sflag [#allocation4], %s2566_s28 }
 0x2ee   : > { %p2932_p7 = pnand %p2935_p6, %p3147_p8 }
 0x2f0   : > { %p2933_p9 = pneg %p2932_p7 }
 0x2f2   : > { %3055 = dma.done.wait (%p2933_p9), %s2567_s29, 4096  }
 0x2f3   : > { %3057 = vsyncadd (%p2933_p9), %s2567_s29, 4294963200  ;;  %s15_s14 = sadd.s32 1, %s3080_s14   ;;  %s4522_s9 = smov %s3064_s10 }
 0x2f4   : > { %p12_p10 = scmp.ge.s32.totalorder %s15_s14, 4   ;;  %s4523_s10 = smov %s3068_s11 }
 0x2f5   : > { %s4524_s11 = smov %s3153_s22  ;;  %s4525_s12 = smov %s3076_s13 }
 0x2f6   : > { %s4526_s13 = smov %s4528_s17  ;;  %14 = sbr.rel (!%p12_p10) target bundleno = 4 (0x4), region = 82 }
 0x2fb   :  { %2573 = vsyncpa [#allocation4], 1 }
 0x2fc   :  { %2575 = vsyncpa [#allocation4 + $0x1], 1 }

</bundles_post_ra>
